<compile_context>
chip_gen: v6e
topology: v6e:2x2x1
jax: 0.10.0
libtpu: 0.0.40
codegen_flags: <defaults>
</compile_context>

<pallas_src>
import math
import functools

import jax
import jax.numpy as jnp
from jax.experimental import pallas as pl
from jax.experimental.pallas import tpu as pltpu

D_CONV = 4
EXPAND = 2
LN_EPS = 1e-5  # nn.LayerNorm default


# ----------------------------- elementwise math ------------------------------

def _sigmoid(x):
    return 1.0 / (1.0 + jnp.exp(-x))


def _silu(x):
    return x * _sigmoid(x)


def _softplus(x):
    # numerically-stable softplus using only exp/log (Mosaic-friendly)
    return jnp.maximum(x, 0.0) + jnp.log(1.0 + jnp.exp(-jnp.abs(x)))


def _erf(x):
    # TODO(synk): Mosaic has no native erf lowering; exact-GELU's erf is
    # approximated with Abramowitz & Stegun 7.1.26 (|err| < 1.5e-7 ~ f32
    # precision), matching PyTorch's default nn.GELU() (approximate='none').
    p = 0.3275911
    a1, a2, a3, a4, a5 = (0.254829592, -0.284496736, 1.421413741,
                          -1.453152027, 1.061405429)
    ax = jnp.abs(x)
    t = 1.0 / (1.0 + p * ax)
    poly = ((((a5 * t + a4) * t + a3) * t + a2) * t + a1) * t
    y = 1.0 - poly * jnp.exp(-ax * ax)
    return jnp.where(x >= 0.0, y, -y)


def _gelu_exact(x):
    return 0.5 * x * (1.0 + _erf(x * 0.7071067811865476))


def _mm_hp(a, b):
    # high-precision f32 matmul (used only on the XLA side: weight folding
    # and the pure-JAX reference, so both paths are ~f32 accurate)
    return jnp.matmul(a, b, precision=jax.lax.Precision.HIGHEST)


# ------------------------------ fused kernel ----------------------------------

def _bimamba_kernel(
        x_ref,
        ln1_g_ref, ln1_b_ref,
        w_in_x_ref, w_in_z_ref,
        w_conv_ref, b_conv_ref,
        w_delta_ref, b_dt_ref,
        wx_b_ref, wx_c_ref,
        neg_a_ref, d_skip_ref,
        w_out_ref,
        ln2_g_ref, ln2_b_ref,
        w_ff1_ref, b_ff1_ref, w_ff2_ref, b_ff2_ref,
        o_ref,
        *, seq_len, d_inner, d_state, d_conv):
    L = seq_len
    x = x_ref[0].astype(jnp.float32)                       # (L, D)  (residual)

    # ---------------- norm1 ----------------
    mu = jnp.mean(x, axis=-1, keepdims=True)
    var = jnp.mean((x - mu) ** 2, axis=-1, keepdims=True)
    xn = (x - mu) * jax.lax.rsqrt(var + LN_EPS) * ln1_g_ref[...] + ln1_b_ref[...]

    # -------- shared in_proj (pointwise in time -> commutes with flip) -------
    xin = jnp.dot(xn, w_in_x_ref[...], preferred_element_type=jnp.float32)   # (L, di)
    zres = jnp.dot(xn, w_in_z_ref[...], preferred_element_type=jnp.float32)  # (L, di)
    gate = _silu(zres)

    w_conv = w_conv_ref[...]                               # (K, di)
    b_conv = b_conv_ref[...]                               # (1, di)
    neg_A = neg_a_ref[...]                                 # (n, di) = -exp(A_log)

    zero_pad = jnp.zeros((d_conv - 1, d_inner), jnp.float32)

    # ---------------- forward direction: causal depthwise conv ----------------
    xpad_f = jnp.concatenate([zero_pad, xin], axis=0)      # (L+K-1, di)
    conv_f = b_conv
    for k in range(d_conv):
        conv_f = conv_f + xpad_f[k:k + L, :] * w_conv[k:k + 1, :]

    # ---- backward direction (flip -> conv -> flip, computed in place) -------
    # out_b[t] = b + sum_k w[k] * xin[t + (K-1-k)]  (zero past the end),
    # i.e. an anti-causal conv with reversed taps; its scan runs t = L-1..0.
    xpad_b = jnp.concatenate([xin, zero_pad], axis=0)      # (L+K-1, di)
    conv_b = b_conv
    for k in range(d_conv):
        conv_b = conv_b + xpad_b[k:k + L, :] * w_conv[d_conv - 1 - k:d_conv - k, :]

    # ------ both directions share one projection pass: (2L, d_inner) slab ----
    xc = _silu(jnp.concatenate([conv_f, conv_b], axis=0))  # (2L, di)

    # x_proj with dt_proj folded in (W_delta = wx_dt @ w_dt, done outside)
    delta = _softplus(
        jnp.dot(xc, w_delta_ref[...], preferred_element_type=jnp.float32)
        + b_dt_ref[...])                                   # (2L, di)
    Bm = jnp.dot(xc, wx_b_ref[...], preferred_element_type=jnp.float32)  # (2L, n)
    Cm = jnp.dot(xc, wx_c_ref[...], preferred_element_type=jnp.float32)  # (2L, n)
    BmT = Bm.T                                             # (n, 2L)
    CmT = Cm.T                                             # (n, 2L)
    du = delta * xc                                        # (2L, di)

    def run_scan(off, reverse):
        # hoist the EUP exp out of the recurrence: one streamed exp per dir
        dA = jnp.exp(delta[off:off + L][:, None, :] * neg_A[None, :, :])  # (L,n,di)
        state = jnp.zeros((d_state, d_inner), jnp.float32)
        ys = [None] * L
        # NOTE: static unroll is fine at L=8; for long sequences switch to
        # lax.fori_loop(..., unroll=k) with a VMEM row buffer.
        order = range(L - 1, -1, -1) if reverse else range(L)
        for t in order:
            c = off + t
            dBu = du[c:c + 1, :] * BmT[:, c:c + 1]         # (n, di)
            state = dA[t] * state + dBu
            ys[t] = jnp.sum(state * CmT[:, c:c + 1], axis=0, keepdims=True)
        return jnp.concatenate(ys, axis=0)                 # (L, di), time order

    y_f = run_scan(0, reverse=False)
    y_b = run_scan(L, reverse=True)

    # D-skip per direction, shared gate, single out_proj for the fwd+bwd sum
    xc_sum = xc[:L] + xc[L:]                               # cheap sublane slices
    y = (y_f + y_b + xc_sum * d_skip_ref[...]) * gate
    m = jnp.dot(y, w_out_ref[...], preferred_element_type=jnp.float32)  # (L, D)

    # --------------- norm2 + FFN (Linear -> GELU -> Linear) + residual -------
    mu2 = jnp.mean(m, axis=-1, keepdims=True)
    var2 = jnp.mean((m - mu2) ** 2, axis=-1, keepdims=True)
    mn = (m - mu2) * jax.lax.rsqrt(var2 + LN_EPS) * ln2_g_ref[...] + ln2_b_ref[...]
    h = _gelu_exact(
        jnp.dot(mn, w_ff1_ref[...], preferred_element_type=jnp.float32)
        + b_ff1_ref[...])
    ff = jnp.dot(h, w_ff2_ref[...], preferred_element_type=jnp.float32) + b_ff2_ref[...]
    o_ref[0] = (ff + x).astype(o_ref.dtype)


# ------------------------------ pallas wrapper --------------------------------

def _full_spec(shape):
    nd = len(shape)
    return pl.BlockSpec(shape, lambda b, nd=nd: (0,) * nd)


def bimamba_encoder(x, params):
    B, L, D = x.shape
    d_inner = params["w_in_x"].shape[1]
    d_state = params["wx_b"].shape[1]
    d_conv = params["w_conv"].shape[0]

    # trace-time weight prep (tiny XLA ops, once per call)
    w_delta = _mm_hp(params["wx_dt"], params["w_dt"])      # fold dt_proj into x_proj
    neg_A = -jnp.exp(params["a_log_t"])                    # (n, d_inner)

    weights = (params["ln1_g"], params["ln1_b"],
               params["w_in_x"], params["w_in_z"],
               params["w_conv"], params["b_conv"],
               w_delta, params["b_dt"],
               params["wx_b"], params["wx_c"],
               neg_A, params["d_skip"],
               params["w_out"],
               params["ln2_g"], params["ln2_b"],
               params["w_ff1"], params["b_ff1"], params["w_ff2"], params["b_ff2"])

    kern = functools.partial(_bimamba_kernel, seq_len=L, d_inner=d_inner,
                             d_state=d_state, d_conv=d_conv)
    seq_spec = pl.BlockSpec((1, L, D), lambda b: (b, 0, 0))
    return pl.pallas_call(
        kern,
        out_shape=jax.ShapeDtypeStruct((B, L, D), x.dtype),
        grid=(B,),
        in_specs=[seq_spec] + [_full_spec(w.shape) for w in weights],
        out_specs=seq_spec,
        compiler_params=pltpu.CompilerParams(dimension_semantics=("parallel",)),
    )(x, *weights)


# --------------------------- pure-JAX reference -------------------------------
# Mirrors the PyTorch module literally (flip -> shared mamba -> flip).

def _layernorm_ref(x, g, b):
    mu = jnp.mean(x, axis=-1, keepdims=True)
    var = jnp.mean((x - mu) ** 2, axis=-1, keepdims=True)
    return (x - mu) * jax.lax.rsqrt(var + LN_EPS) * g + b


def _mamba_ref(x, p):
    Bsz, L, _ = x.shape
    d_conv = p["w_conv"].shape[0]
    xin = _mm_hp(x, p["w_in_x"])
    zres = _mm_hp(x, p["w_in_z"])
    xpad = jnp.pad(xin, ((0, 0), (d_conv - 1, 0), (0, 0)))
    conv = p["b_conv"]
    for k in range(d_conv):
        conv = conv + xpad[:, k:k + L, :] * p["w_conv"][k]
    xc = _silu(conv)
    delta = _softplus(_mm_hp(_mm_hp(xc, p["wx_dt"]), p["w_dt"]) + p["b_dt"])
    Bm = _mm_hp(xc, p["wx_b"])
    Cm = _mm_hp(xc, p["wx_c"])
    A = -jnp.exp(p["a_log_t"])                             # (n, di)
    n, di = A.shape

    def step(state, ins):
        d_t, u_t, b_t, c_t = ins
        dA = jnp.exp(d_t[:, None, :] * A[None])            # (B, n, di)
        dBu = (d_t * u_t)[:, None, :] * b_t[:, :, None]
        state = dA * state + dBu
        y = jnp.sum(state * c_t[:, :, None], axis=1)
        return state, y

    state0 = jnp.zeros((Bsz, n, di), jnp.float32)
    xs = (jnp.swapaxes(delta, 0, 1), jnp.swapaxes(xc, 0, 1),
          jnp.swapaxes(Bm, 0, 1), jnp.swapaxes(Cm, 0, 1))
    _, ys = jax.lax.scan(step, state0, xs)
    y = jnp.swapaxes(ys, 0, 1)                             # (B, L, di)
    y = (y + xc * p["d_skip"]) * _silu(zres)
    return _mm_hp(y, p["w_out"])


def bimamba_reference(x, p):
    residual = x
    xn = _layernorm_ref(x, p["ln1_g"], p["ln1_b"])
    out_f = _mamba_ref(xn, p)
    out_b = jnp.flip(_mamba_ref(jnp.flip(xn, axis=1), p), axis=1)
    mn = _layernorm_ref(out_f + out_b, p["ln2_g"], p["ln2_b"])
    ff = _mm_hp(_gelu_exact(_mm_hp(mn, p["w_ff1"]) + p["b_ff1"]), p["w_ff2"]) + p["b_ff2"]
    return ff + residual


# ----------------------------- parameter init ---------------------------------

def init_params(key, d_model, d_state, d_conv=D_CONV, expand=EXPAND):
    d_inner = expand * d_model
    dt_rank = math.ceil(d_model / 16)
    keys = jax.random.split(key, 12)
    s = 0.05

    def rnd(k, shape):
        return jax.random.normal(k, shape, jnp.float32) * s

    return {
        "ln1_g": jnp.ones((1, d_model), jnp.float32),
        "ln1_b": jnp.zeros((1, d_model), jnp.float32),
        "ln2_g": jnp.ones((1, d_model), jnp.float32),
        "ln2_b": jnp.zeros((1, d_model), jnp.float32),
        # in_proj (d_model -> 2*d_inner), stored as two column blocks
        "w_in_x": rnd(keys[0], (d_model, d_inner)),
        "w_in_z": rnd(keys[1], (d_model, d_inner)),
        # depthwise conv1d weight (d_conv, d_inner) + bias
        "w_conv": rnd(keys[2], (d_conv, d_inner)),
        "b_conv": rnd(keys[3], (1, d_inner)),
        # x_proj (d_inner -> dt_rank + 2*d_state), split by output columns
        "wx_dt": rnd(keys[4], (d_inner, dt_rank)),
        "wx_b": rnd(keys[5], (d_inner, d_state)),
        "wx_c": rnd(keys[6], (d_inner, d_state)),
        # dt_proj (dt_rank -> d_inner)
        "w_dt": rnd(keys[7], (dt_rank, d_inner)),
        "b_dt": rnd(keys[8], (1, d_inner)),
        # S4D-real init: A = -[1..d_state]; stored transposed as (d_state, d_inner)
        "a_log_t": jnp.log(jnp.broadcast_to(
            jnp.arange(1, d_state + 1, dtype=jnp.float32)[:, None],
            (d_state, d_inner))),
        "d_skip": jnp.ones((1, d_inner), jnp.float32),
        # out_proj (d_inner -> d_model)
        "w_out": rnd(keys[9], (d_inner, d_model)),
        # feed-forward
        "w_ff1": rnd(keys[10], (d_model, 4 * d_model)),
        "b_ff1": jnp.zeros((1, 4 * d_model), jnp.float32),
        "w_ff2": rnd(keys[11], (4 * d_model, d_model)),
        "b_ff2": jnp.zeros((1, d_model), jnp.float32),
    }


# ----------------------------------- main --------------------------------------

if __name__ == "__main__":
    d_model, d_state = 32, 16
    B, L = 2, 8

    key = jax.random.PRNGKey(0)
    kx, kp = jax.random.split(key)
    x = jax.random.normal(kx, (B, L, d_model), jnp.float32)
    params = init_params(kp, d_model, d_state)

    ref = jax.block_until_ready(bimamba_reference(x, params))

    out = jax.jit(bimamba_encoder)(x, params)
    out = jax.block_until_ready(out)

    assert out.shape == (B, L, d_model)
    assert bool(jnp.all(jnp.isfinite(out)))
    err = float(jnp.max(jnp.abs(out - ref)))
    assert err < 1e-2, f"kernel mismatch vs pure-JAX reference: max|diff|={err}"
    print("KERNEL_OK")
</pallas_src>

<mosaic_0001>
module attributes {stable_mosaic.version = 11 : i64} {
  func.func @_bimamba_kernel(%arg0: i32, %arg1: memref<1x8x32xf32, #tpu.memory_space<vmem>>, %arg2: memref<1x32xf32, #tpu.memory_space<vmem>>, %arg3: memref<1x32xf32, #tpu.memory_space<vmem>>, %arg4: memref<32x64xf32, #tpu.memory_space<vmem>>, %arg5: memref<32x64xf32, #tpu.memory_space<vmem>>, %arg6: memref<4x64xf32, #tpu.memory_space<vmem>>, %arg7: memref<1x64xf32, #tpu.memory_space<vmem>>, %arg8: memref<64x64xf32, #tpu.memory_space<vmem>>, %arg9: memref<1x64xf32, #tpu.memory_space<vmem>>, %arg10: memref<64x16xf32, #tpu.memory_space<vmem>>, %arg11: memref<64x16xf32, #tpu.memory_space<vmem>>, %arg12: memref<16x64xf32, #tpu.memory_space<vmem>>, %arg13: memref<1x64xf32, #tpu.memory_space<vmem>>, %arg14: memref<64x32xf32, #tpu.memory_space<vmem>>, %arg15: memref<1x32xf32, #tpu.memory_space<vmem>>, %arg16: memref<1x32xf32, #tpu.memory_space<vmem>>, %arg17: memref<32x128xf32, #tpu.memory_space<vmem>>, %arg18: memref<1x128xf32, #tpu.memory_space<vmem>>, %arg19: memref<128x32xf32, #tpu.memory_space<vmem>>, %arg20: memref<1x32xf32, #tpu.memory_space<vmem>>, %arg21: memref<1x8x32xf32, #tpu.memory_space<vmem>>) attributes {dimension_semantics = [#tpu.dimension_semantics<parallel>], iteration_bounds = array<i64: 2>, scalar_prefetch = 0 : i64, scratch_operands = 0 : i64, tpu.core_type = #tpu.core_type<tc>, window_params = [{transform_indices = @transform_0, window_bounds = array<i64: 1, 8, 32>}, {pipeline_mode = #tpu.pipeline_mode<synchronous>, transform_indices = @transform_1, window_bounds = array<i64: 1, 32>}, {pipeline_mode = #tpu.pipeline_mode<synchronous>, transform_indices = @transform_2, window_bounds = array<i64: 1, 32>}, {pipeline_mode = #tpu.pipeline_mode<synchronous>, transform_indices = @transform_3, window_bounds = array<i64: 32, 64>}, {pipeline_mode = #tpu.pipeline_mode<synchronous>, transform_indices = @transform_4, window_bounds = array<i64: 32, 64>}, {pipeline_mode = #tpu.pipeline_mode<synchronous>, transform_indices = @transform_5, window_bounds = array<i64: 4, 64>}, {pipeline_mode = #tpu.pipeline_mode<synchronous>, transform_indices = @transform_6, window_bounds = array<i64: 1, 64>}, {pipeline_mode = #tpu.pipeline_mode<synchronous>, transform_indices = @transform_7, window_bounds = array<i64: 64, 64>}, {pipeline_mode = #tpu.pipeline_mode<synchronous>, transform_indices = @transform_8, window_bounds = array<i64: 1, 64>}, {pipeline_mode = #tpu.pipeline_mode<synchronous>, transform_indices = @transform_9, window_bounds = array<i64: 64, 16>}, {pipeline_mode = #tpu.pipeline_mode<synchronous>, transform_indices = @transform_10, window_bounds = array<i64: 64, 16>}, {pipeline_mode = #tpu.pipeline_mode<synchronous>, transform_indices = @transform_11, window_bounds = array<i64: 16, 64>}, {pipeline_mode = #tpu.pipeline_mode<synchronous>, transform_indices = @transform_12, window_bounds = array<i64: 1, 64>}, {pipeline_mode = #tpu.pipeline_mode<synchronous>, transform_indices = @transform_13, window_bounds = array<i64: 64, 32>}, {pipeline_mode = #tpu.pipeline_mode<synchronous>, transform_indices = @transform_14, window_bounds = array<i64: 1, 32>}, {pipeline_mode = #tpu.pipeline_mode<synchronous>, transform_indices = @transform_15, window_bounds = array<i64: 1, 32>}, {pipeline_mode = #tpu.pipeline_mode<synchronous>, transform_indices = @transform_16, window_bounds = array<i64: 32, 128>}, {pipeline_mode = #tpu.pipeline_mode<synchronous>, transform_indices = @transform_17, window_bounds = array<i64: 1, 128>}, {pipeline_mode = #tpu.pipeline_mode<synchronous>, transform_indices = @transform_18, window_bounds = array<i64: 128, 32>}, {pipeline_mode = #tpu.pipeline_mode<synchronous>, transform_indices = @transform_19, window_bounds = array<i64: 1, 32>}, {transform_indices = @transform_20, window_bounds = array<i64: 1, 8, 32>}]} {
    %c0 = arith.constant 0 : index
    %c0_0 = arith.constant 0 : index
    %c0_1 = arith.constant 0 : index
    %0 = vector.load %arg1[%c0, %c0_0, %c0_1] : memref<1x8x32xf32, #tpu.memory_space<vmem>>, vector<1x8x32xf32>
    %1 = vector.shape_cast %0 : vector<1x8x32xf32> to vector<8x32xf32>
    %cst = arith.constant dense<0.000000e+00> : vector<8xf32>
    %2 = vector.multi_reduction <add>, %1, %cst [1] : vector<8x32xf32> to vector<8xf32>
    %3 = vector.shape_cast %2 : vector<8xf32> to vector<8x1xf32>
    %cst_2 = arith.constant 3.200000e+01 : f32
    %4 = vector.broadcast %cst_2 : f32 to vector<8x1xf32>
    %5 = arith.divf %3, %4 : vector<8x1xf32>
    %6 = vector.broadcast %5 : vector<8x1xf32> to vector<8x32xf32>
    %7 = arith.subf %1, %6 : vector<8x32xf32>
    %8 = arith.mulf %7, %7 : vector<8x32xf32>
    %cst_3 = arith.constant dense<0.000000e+00> : vector<8xf32>
    %9 = vector.multi_reduction <add>, %8, %cst_3 [1] : vector<8x32xf32> to vector<8xf32>
    %10 = vector.shape_cast %9 : vector<8xf32> to vector<8x1xf32>
    %cst_4 = arith.constant 3.200000e+01 : f32
    %11 = vector.broadcast %cst_4 : f32 to vector<8x1xf32>
    %12 = arith.divf %10, %11 : vector<8x1xf32>
    %13 = vector.broadcast %5 : vector<8x1xf32> to vector<8x32xf32>
    %14 = arith.subf %1, %13 : vector<8x32xf32>
    %cst_5 = arith.constant 9.99999974E-6 : f32
    %15 = vector.broadcast %cst_5 : f32 to vector<8x1xf32>
    %16 = arith.addf %12, %15 : vector<8x1xf32>
    %17 = math.rsqrt %16 : vector<8x1xf32>
    %18 = vector.broadcast %17 : vector<8x1xf32> to vector<8x32xf32>
    %19 = arith.mulf %14, %18 : vector<8x32xf32>
    %c0_6 = arith.constant 0 : index
    %c0_7 = arith.constant 0 : index
    %20 = vector.load %arg2[%c0_6, %c0_7] : memref<1x32xf32, #tpu.memory_space<vmem>>, vector<1x32xf32>
    %21 = vector.broadcast %20 : vector<1x32xf32> to vector<8x32xf32>
    %22 = arith.mulf %19, %21 : vector<8x32xf32>
    %c0_8 = arith.constant 0 : index
    %c0_9 = arith.constant 0 : index
    %23 = vector.load %arg3[%c0_8, %c0_9] : memref<1x32xf32, #tpu.memory_space<vmem>>, vector<1x32xf32>
    %24 = vector.broadcast %23 : vector<1x32xf32> to vector<8x32xf32>
    %25 = arith.addf %22, %24 : vector<8x32xf32>
    %c0_10 = arith.constant 0 : index
    %c0_11 = arith.constant 0 : index
    %26 = vector.load %arg4[%c0_10, %c0_11] : memref<32x64xf32, #tpu.memory_space<vmem>>, vector<32x64xf32>
    %cst_12 = arith.constant dense<0.000000e+00> : vector<8x64xf32>
    %27 = tpu.matmul %25, %26, %cst_12 {dimension_numbers = #tpu.dot_dimension_numbers<[1], [0], [0], [1], [0, 0, 1, 1], [], []>} : vector<8x32xf32>, vector<32x64xf32>, vector<8x64xf32> -> vector<8x64xf32>
    %c0_13 = arith.constant 0 : index
    %c0_14 = arith.constant 0 : index
    %28 = vector.load %arg5[%c0_13, %c0_14] : memref<32x64xf32, #tpu.memory_space<vmem>>, vector<32x64xf32>
    %cst_15 = arith.constant dense<0.000000e+00> : vector<8x64xf32>
    %29 = tpu.matmul %25, %28, %cst_15 {dimension_numbers = #tpu.dot_dimension_numbers<[1], [0], [0], [1], [0, 0, 1, 1], [], []>} : vector<8x32xf32>, vector<32x64xf32>, vector<8x64xf32> -> vector<8x64xf32>
    %cst_16 = arith.constant 0.000000e+00 : f32
    %30 = vector.broadcast %cst_16 : f32 to vector<8x64xf32>
    %31 = arith.subf %30, %29 : vector<8x64xf32>
    %32 = math.exp %31 : vector<8x64xf32>
    %cst_17 = arith.constant 1.000000e+00 : f32
    %33 = vector.broadcast %cst_17 : f32 to vector<8x64xf32>
    %34 = arith.addf %33, %32 : vector<8x64xf32>
    %cst_18 = arith.constant 1.000000e+00 : f32
    %35 = vector.broadcast %cst_18 : f32 to vector<8x64xf32>
    %36 = arith.divf %35, %34 : vector<8x64xf32>
    %37 = arith.mulf %29, %36 : vector<8x64xf32>
    %c0_19 = arith.constant 0 : index
    %c0_20 = arith.constant 0 : index
    %38 = vector.load %arg6[%c0_19, %c0_20] : memref<4x64xf32, #tpu.memory_space<vmem>>, vector<4x64xf32>
    %c0_21 = arith.constant 0 : index
    %c0_22 = arith.constant 0 : index
    %39 = vector.load %arg7[%c0_21, %c0_22] : memref<1x64xf32, #tpu.memory_space<vmem>>, vector<1x64xf32>
    %c0_23 = arith.constant 0 : index
    %c0_24 = arith.constant 0 : index
    %40 = vector.load %arg12[%c0_23, %c0_24] : memref<16x64xf32, #tpu.memory_space<vmem>>, vector<16x64xf32>
    %cst_25 = arith.constant 0.000000e+00 : f32
    %41 = vector.broadcast %cst_25 : f32 to vector<3x64xf32>
    %42 = tpu.concatenate %41, %27 in 0 : vector<3x64xf32>, vector<8x64xf32> -> vector<11x64xf32>
    %43 = vector.extract_strided_slice %42 {offsets = [0, 0], sizes = [8, 64], strides = [1, 1]} : vector<11x64xf32> to vector<8x64xf32>
    %44 = vector.extract_strided_slice %38 {offsets = [0, 0], sizes = [1, 64], strides = [1, 1]} : vector<4x64xf32> to vector<1x64xf32>
    %45 = vector.broadcast %44 : vector<1x64xf32> to vector<8x64xf32>
    %46 = arith.mulf %43, %45 : vector<8x64xf32>
    %47 = vector.broadcast %39 : vector<1x64xf32> to vector<8x64xf32>
    %48 = arith.addf %47, %46 : vector<8x64xf32>
    %49 = vector.extract_strided_slice %42 {offsets = [1, 0], sizes = [8, 64], strides = [1, 1]} : vector<11x64xf32> to vector<8x64xf32>
    %50 = vector.extract_strided_slice %38 {offsets = [1, 0], sizes = [1, 64], strides = [1, 1]} : vector<4x64xf32> to vector<1x64xf32>
    %51 = vector.broadcast %50 : vector<1x64xf32> to vector<8x64xf32>
    %52 = arith.mulf %49, %51 : vector<8x64xf32>
    %53 = arith.addf %48, %52 : vector<8x64xf32>
    %54 = vector.extract_strided_slice %42 {offsets = [2, 0], sizes = [8, 64], strides = [1, 1]} : vector<11x64xf32> to vector<8x64xf32>
    %55 = vector.extract_strided_slice %38 {offsets = [2, 0], sizes = [1, 64], strides = [1, 1]} : vector<4x64xf32> to vector<1x64xf32>
    %56 = vector.broadcast %55 : vector<1x64xf32> to vector<8x64xf32>
    %57 = arith.mulf %54, %56 : vector<8x64xf32>
    %58 = arith.addf %53, %57 : vector<8x64xf32>
    %59 = vector.extract_strided_slice %42 {offsets = [3, 0], sizes = [8, 64], strides = [1, 1]} : vector<11x64xf32> to vector<8x64xf32>
    %60 = vector.extract_strided_slice %38 {offsets = [3, 0], sizes = [1, 64], strides = [1, 1]} : vector<4x64xf32> to vector<1x64xf32>
    %61 = vector.broadcast %60 : vector<1x64xf32> to vector<8x64xf32>
    %62 = arith.mulf %59, %61 : vector<8x64xf32>
    %63 = arith.addf %58, %62 : vector<8x64xf32>
    %64 = tpu.concatenate %27, %41 in 0 : vector<8x64xf32>, vector<3x64xf32> -> vector<11x64xf32>
    %65 = vector.extract_strided_slice %64 {offsets = [0, 0], sizes = [8, 64], strides = [1, 1]} : vector<11x64xf32> to vector<8x64xf32>
    %66 = vector.extract_strided_slice %38 {offsets = [3, 0], sizes = [1, 64], strides = [1, 1]} : vector<4x64xf32> to vector<1x64xf32>
    %67 = vector.broadcast %66 : vector<1x64xf32> to vector<8x64xf32>
    %68 = arith.mulf %65, %67 : vector<8x64xf32>
    %69 = vector.broadcast %39 : vector<1x64xf32> to vector<8x64xf32>
    %70 = arith.addf %69, %68 : vector<8x64xf32>
    %71 = vector.extract_strided_slice %64 {offsets = [1, 0], sizes = [8, 64], strides = [1, 1]} : vector<11x64xf32> to vector<8x64xf32>
    %72 = vector.extract_strided_slice %38 {offsets = [2, 0], sizes = [1, 64], strides = [1, 1]} : vector<4x64xf32> to vector<1x64xf32>
    %73 = vector.broadcast %72 : vector<1x64xf32> to vector<8x64xf32>
    %74 = arith.mulf %71, %73 : vector<8x64xf32>
    %75 = arith.addf %70, %74 : vector<8x64xf32>
    %76 = vector.extract_strided_slice %64 {offsets = [2, 0], sizes = [8, 64], strides = [1, 1]} : vector<11x64xf32> to vector<8x64xf32>
    %77 = vector.extract_strided_slice %38 {offsets = [1, 0], sizes = [1, 64], strides = [1, 1]} : vector<4x64xf32> to vector<1x64xf32>
    %78 = vector.broadcast %77 : vector<1x64xf32> to vector<8x64xf32>
    %79 = arith.mulf %76, %78 : vector<8x64xf32>
    %80 = arith.addf %75, %79 : vector<8x64xf32>
    %81 = vector.extract_strided_slice %64 {offsets = [3, 0], sizes = [8, 64], strides = [1, 1]} : vector<11x64xf32> to vector<8x64xf32>
    %82 = vector.extract_strided_slice %38 {offsets = [0, 0], sizes = [1, 64], strides = [1, 1]} : vector<4x64xf32> to vector<1x64xf32>
    %83 = vector.broadcast %82 : vector<1x64xf32> to vector<8x64xf32>
    %84 = arith.mulf %81, %83 : vector<8x64xf32>
    %85 = arith.addf %80, %84 : vector<8x64xf32>
    %86 = tpu.concatenate %63, %85 in 0 : vector<8x64xf32>, vector<8x64xf32> -> vector<16x64xf32>
    %cst_26 = arith.constant 0.000000e+00 : f32
    %87 = vector.broadcast %cst_26 : f32 to vector<16x64xf32>
    %88 = arith.subf %87, %86 : vector<16x64xf32>
    %89 = math.exp %88 : vector<16x64xf32>
    %cst_27 = arith.constant 1.000000e+00 : f32
    %90 = vector.broadcast %cst_27 : f32 to vector<16x64xf32>
    %91 = arith.addf %90, %89 : vector<16x64xf32>
    %cst_28 = arith.constant 1.000000e+00 : f32
    %92 = vector.broadcast %cst_28 : f32 to vector<16x64xf32>
    %93 = arith.divf %92, %91 : vector<16x64xf32>
    %94 = arith.mulf %86, %93 : vector<16x64xf32>
    %c0_29 = arith.constant 0 : index
    %c0_30 = arith.constant 0 : index
    %95 = vector.load %arg8[%c0_29, %c0_30] : memref<64x64xf32, #tpu.memory_space<vmem>>, vector<64x64xf32>
    %cst_31 = arith.constant dense<0.000000e+00> : vector<16x64xf32>
    %96 = tpu.matmul %94, %95, %cst_31 {dimension_numbers = #tpu.dot_dimension_numbers<[1], [0], [0], [1], [0, 0, 1, 1], [], []>} : vector<16x64xf32>, vector<64x64xf32>, vector<16x64xf32> -> vector<16x64xf32>
    %c0_32 = arith.constant 0 : index
    %c0_33 = arith.constant 0 : index
    %97 = vector.load %arg9[%c0_32, %c0_33] : memref<1x64xf32, #tpu.memory_space<vmem>>, vector<1x64xf32>
    %98 = vector.broadcast %97 : vector<1x64xf32> to vector<16x64xf32>
    %99 = arith.addf %96, %98 : vector<16x64xf32>
    %cst_34 = arith.constant 0.000000e+00 : f32
    %100 = vector.broadcast %cst_34 : f32 to vector<16x64xf32>
    %101 = arith.maximumf %99, %100 : vector<16x64xf32>
    %102 = math.absf %99 : vector<16x64xf32>
    %cst_35 = arith.constant 0.000000e+00 : f32
    %103 = vector.broadcast %cst_35 : f32 to vector<16x64xf32>
    %104 = arith.subf %103, %102 : vector<16x64xf32>
    %105 = math.exp %104 : vector<16x64xf32>
    %cst_36 = arith.constant 1.000000e+00 : f32
    %106 = vector.broadcast %cst_36 : f32 to vector<16x64xf32>
    %107 = arith.addf %106, %105 : vector<16x64xf32>
    %108 = math.log %107 : vector<16x64xf32>
    %109 = arith.addf %101, %108 : vector<16x64xf32>
    %c0_37 = arith.constant 0 : index
    %c0_38 = arith.constant 0 : index
    %110 = vector.load %arg10[%c0_37, %c0_38] : memref<64x16xf32, #tpu.memory_space<vmem>>, vector<64x16xf32>
    %cst_39 = arith.constant dense<0.000000e+00> : vector<16x16xf32>
    %111 = tpu.matmul %94, %110, %cst_39 {dimension_numbers = #tpu.dot_dimension_numbers<[1], [0], [0], [1], [0, 0, 1, 1], [], []>} : vector<16x64xf32>, vector<64x16xf32>, vector<16x16xf32> -> vector<16x16xf32>
    %c0_40 = arith.constant 0 : index
    %c0_41 = arith.constant 0 : index
    %112 = vector.load %arg11[%c0_40, %c0_41] : memref<64x16xf32, #tpu.memory_space<vmem>>, vector<64x16xf32>
    %cst_42 = arith.constant dense<0.000000e+00> : vector<16x16xf32>
    %113 = tpu.matmul %94, %112, %cst_42 {dimension_numbers = #tpu.dot_dimension_numbers<[1], [0], [0], [1], [0, 0, 1, 1], [], []>} : vector<16x64xf32>, vector<64x16xf32>, vector<16x16xf32> -> vector<16x16xf32>
    %114 = tpu.transpose %111, [1, 0] : vector<16x16xf32> -> vector<16x16xf32>
    %115 = tpu.transpose %113, [1, 0] : vector<16x16xf32> -> vector<16x16xf32>
    %116 = arith.mulf %109, %94 : vector<16x64xf32>
    %117 = vector.extract_strided_slice %109 {offsets = [0, 0], sizes = [8, 64], strides = [1, 1]} : vector<16x64xf32> to vector<8x64xf32>
    %118 = vector.shape_cast %117 : vector<8x64xf32> to vector<8x1x64xf32>
    %119 = vector.shape_cast %40 : vector<16x64xf32> to vector<1x16x64xf32>
    %120 = vector.broadcast %118 : vector<8x1x64xf32> to vector<8x16x64xf32>
    %121 = vector.broadcast %119 : vector<1x16x64xf32> to vector<8x16x64xf32>
    %122 = arith.mulf %120, %121 : vector<8x16x64xf32>
    %123 = math.exp %122 : vector<8x16x64xf32>
    %cst_43 = arith.constant 0.000000e+00 : f32
    %124 = vector.broadcast %cst_43 : f32 to vector<16x64xf32>
    %125 = vector.extract_strided_slice %116 {offsets = [0, 0], sizes = [1, 64], strides = [1, 1]} : vector<16x64xf32> to vector<1x64xf32>
    %126 = vector.extract_strided_slice %114 {offsets = [0, 0], sizes = [16, 1], strides = [1, 1]} : vector<16x16xf32> to vector<16x1xf32>
    %127 = vector.broadcast %125 : vector<1x64xf32> to vector<16x64xf32>
    %128 = vector.broadcast %126 : vector<16x1xf32> to vector<16x64xf32>
    %129 = arith.mulf %127, %128 : vector<16x64xf32>
    %130 = vector.extract_strided_slice %123 {offsets = [0, 0, 0], sizes = [1, 16, 64], strides = [1, 1, 1]} : vector<8x16x64xf32> to vector<1x16x64xf32>
    %131 = vector.shape_cast %130 : vector<1x16x64xf32> to vector<16x64xf32>
    %132 = arith.mulf %131, %124 : vector<16x64xf32>
    %133 = arith.addf %132, %129 : vector<16x64xf32>
    %134 = vector.extract_strided_slice %115 {offsets = [0, 0], sizes = [16, 1], strides = [1, 1]} : vector<16x16xf32> to vector<16x1xf32>
    %135 = vector.broadcast %134 : vector<16x1xf32> to vector<16x64xf32>
    %136 = arith.mulf %133, %135 : vector<16x64xf32>
    %cst_44 = arith.constant dense<0.000000e+00> : vector<64xf32>
    %137 = vector.multi_reduction <add>, %136, %cst_44 [0] : vector<16x64xf32> to vector<64xf32>
    %138 = vector.shape_cast %137 : vector<64xf32> to vector<1x64xf32>
    %139 = vector.extract_strided_slice %116 {offsets = [1, 0], sizes = [1, 64], strides = [1, 1]} : vector<16x64xf32> to vector<1x64xf32>
    %140 = vector.extract_strided_slice %114 {offsets = [0, 1], sizes = [16, 1], strides = [1, 1]} : vector<16x16xf32> to vector<16x1xf32>
    %141 = vector.broadcast %139 : vector<1x64xf32> to vector<16x64xf32>
    %142 = vector.broadcast %140 : vector<16x1xf32> to vector<16x64xf32>
    %143 = arith.mulf %141, %142 : vector<16x64xf32>
    %144 = vector.extract_strided_slice %123 {offsets = [1, 0, 0], sizes = [1, 16, 64], strides = [1, 1, 1]} : vector<8x16x64xf32> to vector<1x16x64xf32>
    %145 = vector.shape_cast %144 : vector<1x16x64xf32> to vector<16x64xf32>
    %146 = arith.mulf %145, %133 : vector<16x64xf32>
    %147 = arith.addf %146, %143 : vector<16x64xf32>
    %148 = vector.extract_strided_slice %115 {offsets = [0, 1], sizes = [16, 1], strides = [1, 1]} : vector<16x16xf32> to vector<16x1xf32>
    %149 = vector.broadcast %148 : vector<16x1xf32> to vector<16x64xf32>
    %150 = arith.mulf %147, %149 : vector<16x64xf32>
    %cst_45 = arith.constant dense<0.000000e+00> : vector<64xf32>
    %151 = vector.multi_reduction <add>, %150, %cst_45 [0] : vector<16x64xf32> to vector<64xf32>
    %152 = vector.shape_cast %151 : vector<64xf32> to vector<1x64xf32>
    %153 = vector.extract_strided_slice %116 {offsets = [2, 0], sizes = [1, 64], strides = [1, 1]} : vector<16x64xf32> to vector<1x64xf32>
    %154 = vector.extract_strided_slice %114 {offsets = [0, 2], sizes = [16, 1], strides = [1, 1]} : vector<16x16xf32> to vector<16x1xf32>
    %155 = vector.broadcast %153 : vector<1x64xf32> to vector<16x64xf32>
    %156 = vector.broadcast %154 : vector<16x1xf32> to vector<16x64xf32>
    %157 = arith.mulf %155, %156 : vector<16x64xf32>
    %158 = vector.extract_strided_slice %123 {offsets = [2, 0, 0], sizes = [1, 16, 64], strides = [1, 1, 1]} : vector<8x16x64xf32> to vector<1x16x64xf32>
    %159 = vector.shape_cast %158 : vector<1x16x64xf32> to vector<16x64xf32>
    %160 = arith.mulf %159, %147 : vector<16x64xf32>
    %161 = arith.addf %160, %157 : vector<16x64xf32>
    %162 = vector.extract_strided_slice %115 {offsets = [0, 2], sizes = [16, 1], strides = [1, 1]} : vector<16x16xf32> to vector<16x1xf32>
    %163 = vector.broadcast %162 : vector<16x1xf32> to vector<16x64xf32>
    %164 = arith.mulf %161, %163 : vector<16x64xf32>
    %cst_46 = arith.constant dense<0.000000e+00> : vector<64xf32>
    %165 = vector.multi_reduction <add>, %164, %cst_46 [0] : vector<16x64xf32> to vector<64xf32>
    %166 = vector.shape_cast %165 : vector<64xf32> to vector<1x64xf32>
    %167 = vector.extract_strided_slice %116 {offsets = [3, 0], sizes = [1, 64], strides = [1, 1]} : vector<16x64xf32> to vector<1x64xf32>
    %168 = vector.extract_strided_slice %114 {offsets = [0, 3], sizes = [16, 1], strides = [1, 1]} : vector<16x16xf32> to vector<16x1xf32>
    %169 = vector.broadcast %167 : vector<1x64xf32> to vector<16x64xf32>
    %170 = vector.broadcast %168 : vector<16x1xf32> to vector<16x64xf32>
    %171 = arith.mulf %169, %170 : vector<16x64xf32>
    %172 = vector.extract_strided_slice %123 {offsets = [3, 0, 0], sizes = [1, 16, 64], strides = [1, 1, 1]} : vector<8x16x64xf32> to vector<1x16x64xf32>
    %173 = vector.shape_cast %172 : vector<1x16x64xf32> to vector<16x64xf32>
    %174 = arith.mulf %173, %161 : vector<16x64xf32>
    %175 = arith.addf %174, %171 : vector<16x64xf32>
    %176 = vector.extract_strided_slice %115 {offsets = [0, 3], sizes = [16, 1], strides = [1, 1]} : vector<16x16xf32> to vector<16x1xf32>
    %177 = vector.broadcast %176 : vector<16x1xf32> to vector<16x64xf32>
    %178 = arith.mulf %175, %177 : vector<16x64xf32>
    %cst_47 = arith.constant dense<0.000000e+00> : vector<64xf32>
    %179 = vector.multi_reduction <add>, %178, %cst_47 [0] : vector<16x64xf32> to vector<64xf32>
    %180 = vector.shape_cast %179 : vector<64xf32> to vector<1x64xf32>
    %181 = vector.extract_strided_slice %116 {offsets = [4, 0], sizes = [1, 64], strides = [1, 1]} : vector<16x64xf32> to vector<1x64xf32>
    %182 = vector.extract_strided_slice %114 {offsets = [0, 4], sizes = [16, 1], strides = [1, 1]} : vector<16x16xf32> to vector<16x1xf32>
    %183 = vector.broadcast %181 : vector<1x64xf32> to vector<16x64xf32>
    %184 = vector.broadcast %182 : vector<16x1xf32> to vector<16x64xf32>
    %185 = arith.mulf %183, %184 : vector<16x64xf32>
    %186 = vector.extract_strided_slice %123 {offsets = [4, 0, 0], sizes = [1, 16, 64], strides = [1, 1, 1]} : vector<8x16x64xf32> to vector<1x16x64xf32>
    %187 = vector.shape_cast %186 : vector<1x16x64xf32> to vector<16x64xf32>
    %188 = arith.mulf %187, %175 : vector<16x64xf32>
    %189 = arith.addf %188, %185 : vector<16x64xf32>
    %190 = vector.extract_strided_slice %115 {offsets = [0, 4], sizes = [16, 1], strides = [1, 1]} : vector<16x16xf32> to vector<16x1xf32>
    %191 = vector.broadcast %190 : vector<16x1xf32> to vector<16x64xf32>
    %192 = arith.mulf %189, %191 : vector<16x64xf32>
    %cst_48 = arith.constant dense<0.000000e+00> : vector<64xf32>
    %193 = vector.multi_reduction <add>, %192, %cst_48 [0] : vector<16x64xf32> to vector<64xf32>
    %194 = vector.shape_cast %193 : vector<64xf32> to vector<1x64xf32>
    %195 = vector.extract_strided_slice %116 {offsets = [5, 0], sizes = [1, 64], strides = [1, 1]} : vector<16x64xf32> to vector<1x64xf32>
    %196 = vector.extract_strided_slice %114 {offsets = [0, 5], sizes = [16, 1], strides = [1, 1]} : vector<16x16xf32> to vector<16x1xf32>
    %197 = vector.broadcast %195 : vector<1x64xf32> to vector<16x64xf32>
    %198 = vector.broadcast %196 : vector<16x1xf32> to vector<16x64xf32>
    %199 = arith.mulf %197, %198 : vector<16x64xf32>
    %200 = vector.extract_strided_slice %123 {offsets = [5, 0, 0], sizes = [1, 16, 64], strides = [1, 1, 1]} : vector<8x16x64xf32> to vector<1x16x64xf32>
    %201 = vector.shape_cast %200 : vector<1x16x64xf32> to vector<16x64xf32>
    %202 = arith.mulf %201, %189 : vector<16x64xf32>
    %203 = arith.addf %202, %199 : vector<16x64xf32>
    %204 = vector.extract_strided_slice %115 {offsets = [0, 5], sizes = [16, 1], strides = [1, 1]} : vector<16x16xf32> to vector<16x1xf32>
    %205 = vector.broadcast %204 : vector<16x1xf32> to vector<16x64xf32>
    %206 = arith.mulf %203, %205 : vector<16x64xf32>
    %cst_49 = arith.constant dense<0.000000e+00> : vector<64xf32>
    %207 = vector.multi_reduction <add>, %206, %cst_49 [0] : vector<16x64xf32> to vector<64xf32>
    %208 = vector.shape_cast %207 : vector<64xf32> to vector<1x64xf32>
    %209 = vector.extract_strided_slice %116 {offsets = [6, 0], sizes = [1, 64], strides = [1, 1]} : vector<16x64xf32> to vector<1x64xf32>
    %210 = vector.extract_strided_slice %114 {offsets = [0, 6], sizes = [16, 1], strides = [1, 1]} : vector<16x16xf32> to vector<16x1xf32>
    %211 = vector.broadcast %209 : vector<1x64xf32> to vector<16x64xf32>
    %212 = vector.broadcast %210 : vector<16x1xf32> to vector<16x64xf32>
    %213 = arith.mulf %211, %212 : vector<16x64xf32>
    %214 = vector.extract_strided_slice %123 {offsets = [6, 0, 0], sizes = [1, 16, 64], strides = [1, 1, 1]} : vector<8x16x64xf32> to vector<1x16x64xf32>
    %215 = vector.shape_cast %214 : vector<1x16x64xf32> to vector<16x64xf32>
    %216 = arith.mulf %215, %203 : vector<16x64xf32>
    %217 = arith.addf %216, %213 : vector<16x64xf32>
    %218 = vector.extract_strided_slice %115 {offsets = [0, 6], sizes = [16, 1], strides = [1, 1]} : vector<16x16xf32> to vector<16x1xf32>
    %219 = vector.broadcast %218 : vector<16x1xf32> to vector<16x64xf32>
    %220 = arith.mulf %217, %219 : vector<16x64xf32>
    %cst_50 = arith.constant dense<0.000000e+00> : vector<64xf32>
    %221 = vector.multi_reduction <add>, %220, %cst_50 [0] : vector<16x64xf32> to vector<64xf32>
    %222 = vector.shape_cast %221 : vector<64xf32> to vector<1x64xf32>
    %223 = vector.extract_strided_slice %116 {offsets = [7, 0], sizes = [1, 64], strides = [1, 1]} : vector<16x64xf32> to vector<1x64xf32>
    %224 = vector.extract_strided_slice %114 {offsets = [0, 7], sizes = [16, 1], strides = [1, 1]} : vector<16x16xf32> to vector<16x1xf32>
    %225 = vector.broadcast %223 : vector<1x64xf32> to vector<16x64xf32>
    %226 = vector.broadcast %224 : vector<16x1xf32> to vector<16x64xf32>
    %227 = arith.mulf %225, %226 : vector<16x64xf32>
    %228 = vector.extract_strided_slice %123 {offsets = [7, 0, 0], sizes = [1, 16, 64], strides = [1, 1, 1]} : vector<8x16x64xf32> to vector<1x16x64xf32>
    %229 = vector.shape_cast %228 : vector<1x16x64xf32> to vector<16x64xf32>
    %230 = arith.mulf %229, %217 : vector<16x64xf32>
    %231 = arith.addf %230, %227 : vector<16x64xf32>
    %232 = vector.extract_strided_slice %115 {offsets = [0, 7], sizes = [16, 1], strides = [1, 1]} : vector<16x16xf32> to vector<16x1xf32>
    %233 = vector.broadcast %232 : vector<16x1xf32> to vector<16x64xf32>
    %234 = arith.mulf %231, %233 : vector<16x64xf32>
    %cst_51 = arith.constant dense<0.000000e+00> : vector<64xf32>
    %235 = vector.multi_reduction <add>, %234, %cst_51 [0] : vector<16x64xf32> to vector<64xf32>
    %236 = vector.shape_cast %235 : vector<64xf32> to vector<1x64xf32>
    %237 = tpu.concatenate %138, %152, %166, %180, %194, %208, %222, %236 in 0 : vector<1x64xf32>, vector<1x64xf32>, vector<1x64xf32>, vector<1x64xf32>, vector<1x64xf32>, vector<1x64xf32>, vector<1x64xf32>, vector<1x64xf32> -> vector<8x64xf32>
    %238 = vector.extract_strided_slice %109 {offsets = [8, 0], sizes = [8, 64], strides = [1, 1]} : vector<16x64xf32> to vector<8x64xf32>
    %239 = vector.shape_cast %238 : vector<8x64xf32> to vector<8x1x64xf32>
    %240 = vector.shape_cast %40 : vector<16x64xf32> to vector<1x16x64xf32>
    %241 = vector.broadcast %239 : vector<8x1x64xf32> to vector<8x16x64xf32>
    %242 = vector.broadcast %240 : vector<1x16x64xf32> to vector<8x16x64xf32>
    %243 = arith.mulf %241, %242 : vector<8x16x64xf32>
    %244 = math.exp %243 : vector<8x16x64xf32>
    %cst_52 = arith.constant 0.000000e+00 : f32
    %245 = vector.broadcast %cst_52 : f32 to vector<16x64xf32>
    %246 = vector.extract_strided_slice %116 {offsets = [15, 0], sizes = [1, 64], strides = [1, 1]} : vector<16x64xf32> to vector<1x64xf32>
    %247 = vector.extract_strided_slice %114 {offsets = [0, 15], sizes = [16, 1], strides = [1, 1]} : vector<16x16xf32> to vector<16x1xf32>
    %248 = vector.broadcast %246 : vector<1x64xf32> to vector<16x64xf32>
    %249 = vector.broadcast %247 : vector<16x1xf32> to vector<16x64xf32>
    %250 = arith.mulf %248, %249 : vector<16x64xf32>
    %251 = vector.extract_strided_slice %244 {offsets = [7, 0, 0], sizes = [1, 16, 64], strides = [1, 1, 1]} : vector<8x16x64xf32> to vector<1x16x64xf32>
    %252 = vector.shape_cast %251 : vector<1x16x64xf32> to vector<16x64xf32>
    %253 = arith.mulf %252, %245 : vector<16x64xf32>
    %254 = arith.addf %253, %250 : vector<16x64xf32>
    %255 = vector.extract_strided_slice %115 {offsets = [0, 15], sizes = [16, 1], strides = [1, 1]} : vector<16x16xf32> to vector<16x1xf32>
    %256 = vector.broadcast %255 : vector<16x1xf32> to vector<16x64xf32>
    %257 = arith.mulf %254, %256 : vector<16x64xf32>
    %cst_53 = arith.constant dense<0.000000e+00> : vector<64xf32>
    %258 = vector.multi_reduction <add>, %257, %cst_53 [0] : vector<16x64xf32> to vector<64xf32>
    %259 = vector.shape_cast %258 : vector<64xf32> to vector<1x64xf32>
    %260 = vector.extract_strided_slice %116 {offsets = [14, 0], sizes = [1, 64], strides = [1, 1]} : vector<16x64xf32> to vector<1x64xf32>
    %261 = vector.extract_strided_slice %114 {offsets = [0, 14], sizes = [16, 1], strides = [1, 1]} : vector<16x16xf32> to vector<16x1xf32>
    %262 = vector.broadcast %260 : vector<1x64xf32> to vector<16x64xf32>
    %263 = vector.broadcast %261 : vector<16x1xf32> to vector<16x64xf32>
    %264 = arith.mulf %262, %263 : vector<16x64xf32>
    %265 = vector.extract_strided_slice %244 {offsets = [6, 0, 0], sizes = [1, 16, 64], strides = [1, 1, 1]} : vector<8x16x64xf32> to vector<1x16x64xf32>
    %266 = vector.shape_cast %265 : vector<1x16x64xf32> to vector<16x64xf32>
    %267 = arith.mulf %266, %254 : vector<16x64xf32>
    %268 = arith.addf %267, %264 : vector<16x64xf32>
    %269 = vector.extract_strided_slice %115 {offsets = [0, 14], sizes = [16, 1], strides = [1, 1]} : vector<16x16xf32> to vector<16x1xf32>
    %270 = vector.broadcast %269 : vector<16x1xf32> to vector<16x64xf32>
    %271 = arith.mulf %268, %270 : vector<16x64xf32>
    %cst_54 = arith.constant dense<0.000000e+00> : vector<64xf32>
    %272 = vector.multi_reduction <add>, %271, %cst_54 [0] : vector<16x64xf32> to vector<64xf32>
    %273 = vector.shape_cast %272 : vector<64xf32> to vector<1x64xf32>
    %274 = vector.extract_strided_slice %116 {offsets = [13, 0], sizes = [1, 64], strides = [1, 1]} : vector<16x64xf32> to vector<1x64xf32>
    %275 = vector.extract_strided_slice %114 {offsets = [0, 13], sizes = [16, 1], strides = [1, 1]} : vector<16x16xf32> to vector<16x1xf32>
    %276 = vector.broadcast %274 : vector<1x64xf32> to vector<16x64xf32>
    %277 = vector.broadcast %275 : vector<16x1xf32> to vector<16x64xf32>
    %278 = arith.mulf %276, %277 : vector<16x64xf32>
    %279 = vector.extract_strided_slice %244 {offsets = [5, 0, 0], sizes = [1, 16, 64], strides = [1, 1, 1]} : vector<8x16x64xf32> to vector<1x16x64xf32>
    %280 = vector.shape_cast %279 : vector<1x16x64xf32> to vector<16x64xf32>
    %281 = arith.mulf %280, %268 : vector<16x64xf32>
    %282 = arith.addf %281, %278 : vector<16x64xf32>
    %283 = vector.extract_strided_slice %115 {offsets = [0, 13], sizes = [16, 1], strides = [1, 1]} : vector<16x16xf32> to vector<16x1xf32>
    %284 = vector.broadcast %283 : vector<16x1xf32> to vector<16x64xf32>
    %285 = arith.mulf %282, %284 : vector<16x64xf32>
    %cst_55 = arith.constant dense<0.000000e+00> : vector<64xf32>
    %286 = vector.multi_reduction <add>, %285, %cst_55 [0] : vector<16x64xf32> to vector<64xf32>
    %287 = vector.shape_cast %286 : vector<64xf32> to vector<1x64xf32>
    %288 = vector.extract_strided_slice %116 {offsets = [12, 0], sizes = [1, 64], strides = [1, 1]} : vector<16x64xf32> to vector<1x64xf32>
    %289 = vector.extract_strided_slice %114 {offsets = [0, 12], sizes = [16, 1], strides = [1, 1]} : vector<16x16xf32> to vector<16x1xf32>
    %290 = vector.broadcast %288 : vector<1x64xf32> to vector<16x64xf32>
    %291 = vector.broadcast %289 : vector<16x1xf32> to vector<16x64xf32>
    %292 = arith.mulf %290, %291 : vector<16x64xf32>
    %293 = vector.extract_strided_slice %244 {offsets = [4, 0, 0], sizes = [1, 16, 64], strides = [1, 1, 1]} : vector<8x16x64xf32> to vector<1x16x64xf32>
    %294 = vector.shape_cast %293 : vector<1x16x64xf32> to vector<16x64xf32>
    %295 = arith.mulf %294, %282 : vector<16x64xf32>
    %296 = arith.addf %295, %292 : vector<16x64xf32>
    %297 = vector.extract_strided_slice %115 {offsets = [0, 12], sizes = [16, 1], strides = [1, 1]} : vector<16x16xf32> to vector<16x1xf32>
    %298 = vector.broadcast %297 : vector<16x1xf32> to vector<16x64xf32>
    %299 = arith.mulf %296, %298 : vector<16x64xf32>
    %cst_56 = arith.constant dense<0.000000e+00> : vector<64xf32>
    %300 = vector.multi_reduction <add>, %299, %cst_56 [0] : vector<16x64xf32> to vector<64xf32>
    %301 = vector.shape_cast %300 : vector<64xf32> to vector<1x64xf32>
    %302 = vector.extract_strided_slice %116 {offsets = [11, 0], sizes = [1, 64], strides = [1, 1]} : vector<16x64xf32> to vector<1x64xf32>
    %303 = vector.extract_strided_slice %114 {offsets = [0, 11], sizes = [16, 1], strides = [1, 1]} : vector<16x16xf32> to vector<16x1xf32>
    %304 = vector.broadcast %302 : vector<1x64xf32> to vector<16x64xf32>
    %305 = vector.broadcast %303 : vector<16x1xf32> to vector<16x64xf32>
    %306 = arith.mulf %304, %305 : vector<16x64xf32>
    %307 = vector.extract_strided_slice %244 {offsets = [3, 0, 0], sizes = [1, 16, 64], strides = [1, 1, 1]} : vector<8x16x64xf32> to vector<1x16x64xf32>
    %308 = vector.shape_cast %307 : vector<1x16x64xf32> to vector<16x64xf32>
    %309 = arith.mulf %308, %296 : vector<16x64xf32>
    %310 = arith.addf %309, %306 : vector<16x64xf32>
    %311 = vector.extract_strided_slice %115 {offsets = [0, 11], sizes = [16, 1], strides = [1, 1]} : vector<16x16xf32> to vector<16x1xf32>
    %312 = vector.broadcast %311 : vector<16x1xf32> to vector<16x64xf32>
    %313 = arith.mulf %310, %312 : vector<16x64xf32>
    %cst_57 = arith.constant dense<0.000000e+00> : vector<64xf32>
    %314 = vector.multi_reduction <add>, %313, %cst_57 [0] : vector<16x64xf32> to vector<64xf32>
    %315 = vector.shape_cast %314 : vector<64xf32> to vector<1x64xf32>
    %316 = vector.extract_strided_slice %116 {offsets = [10, 0], sizes = [1, 64], strides = [1, 1]} : vector<16x64xf32> to vector<1x64xf32>
    %317 = vector.extract_strided_slice %114 {offsets = [0, 10], sizes = [16, 1], strides = [1, 1]} : vector<16x16xf32> to vector<16x1xf32>
    %318 = vector.broadcast %316 : vector<1x64xf32> to vector<16x64xf32>
    %319 = vector.broadcast %317 : vector<16x1xf32> to vector<16x64xf32>
    %320 = arith.mulf %318, %319 : vector<16x64xf32>
    %321 = vector.extract_strided_slice %244 {offsets = [2, 0, 0], sizes = [1, 16, 64], strides = [1, 1, 1]} : vector<8x16x64xf32> to vector<1x16x64xf32>
    %322 = vector.shape_cast %321 : vector<1x16x64xf32> to vector<16x64xf32>
    %323 = arith.mulf %322, %310 : vector<16x64xf32>
    %324 = arith.addf %323, %320 : vector<16x64xf32>
    %325 = vector.extract_strided_slice %115 {offsets = [0, 10], sizes = [16, 1], strides = [1, 1]} : vector<16x16xf32> to vector<16x1xf32>
    %326 = vector.broadcast %325 : vector<16x1xf32> to vector<16x64xf32>
    %327 = arith.mulf %324, %326 : vector<16x64xf32>
    %cst_58 = arith.constant dense<0.000000e+00> : vector<64xf32>
    %328 = vector.multi_reduction <add>, %327, %cst_58 [0] : vector<16x64xf32> to vector<64xf32>
    %329 = vector.shape_cast %328 : vector<64xf32> to vector<1x64xf32>
    %330 = vector.extract_strided_slice %116 {offsets = [9, 0], sizes = [1, 64], strides = [1, 1]} : vector<16x64xf32> to vector<1x64xf32>
    %331 = vector.extract_strided_slice %114 {offsets = [0, 9], sizes = [16, 1], strides = [1, 1]} : vector<16x16xf32> to vector<16x1xf32>
    %332 = vector.broadcast %330 : vector<1x64xf32> to vector<16x64xf32>
    %333 = vector.broadcast %331 : vector<16x1xf32> to vector<16x64xf32>
    %334 = arith.mulf %332, %333 : vector<16x64xf32>
    %335 = vector.extract_strided_slice %244 {offsets = [1, 0, 0], sizes = [1, 16, 64], strides = [1, 1, 1]} : vector<8x16x64xf32> to vector<1x16x64xf32>
    %336 = vector.shape_cast %335 : vector<1x16x64xf32> to vector<16x64xf32>
    %337 = arith.mulf %336, %324 : vector<16x64xf32>
    %338 = arith.addf %337, %334 : vector<16x64xf32>
    %339 = vector.extract_strided_slice %115 {offsets = [0, 9], sizes = [16, 1], strides = [1, 1]} : vector<16x16xf32> to vector<16x1xf32>
    %340 = vector.broadcast %339 : vector<16x1xf32> to vector<16x64xf32>
    %341 = arith.mulf %338, %340 : vector<16x64xf32>
    %cst_59 = arith.constant dense<0.000000e+00> : vector<64xf32>
    %342 = vector.multi_reduction <add>, %341, %cst_59 [0] : vector<16x64xf32> to vector<64xf32>
    %343 = vector.shape_cast %342 : vector<64xf32> to vector<1x64xf32>
    %344 = vector.extract_strided_slice %116 {offsets = [8, 0], sizes = [1, 64], strides = [1, 1]} : vector<16x64xf32> to vector<1x64xf32>
    %345 = vector.extract_strided_slice %114 {offsets = [0, 8], sizes = [16, 1], strides = [1, 1]} : vector<16x16xf32> to vector<16x1xf32>
    %346 = vector.broadcast %344 : vector<1x64xf32> to vector<16x64xf32>
    %347 = vector.broadcast %345 : vector<16x1xf32> to vector<16x64xf32>
    %348 = arith.mulf %346, %347 : vector<16x64xf32>
    %349 = vector.extract_strided_slice %244 {offsets = [0, 0, 0], sizes = [1, 16, 64], strides = [1, 1, 1]} : vector<8x16x64xf32> to vector<1x16x64xf32>
    %350 = vector.shape_cast %349 : vector<1x16x64xf32> to vector<16x64xf32>
    %351 = arith.mulf %350, %338 : vector<16x64xf32>
    %352 = arith.addf %351, %348 : vector<16x64xf32>
    %353 = vector.extract_strided_slice %115 {offsets = [0, 8], sizes = [16, 1], strides = [1, 1]} : vector<16x16xf32> to vector<16x1xf32>
    %354 = vector.broadcast %353 : vector<16x1xf32> to vector<16x64xf32>
    %355 = arith.mulf %352, %354 : vector<16x64xf32>
    %cst_60 = arith.constant dense<0.000000e+00> : vector<64xf32>
    %356 = vector.multi_reduction <add>, %355, %cst_60 [0] : vector<16x64xf32> to vector<64xf32>
    %357 = vector.shape_cast %356 : vector<64xf32> to vector<1x64xf32>
    %358 = tpu.concatenate %357, %343, %329, %315, %301, %287, %273, %259 in 0 : vector<1x64xf32>, vector<1x64xf32>, vector<1x64xf32>, vector<1x64xf32>, vector<1x64xf32>, vector<1x64xf32>, vector<1x64xf32>, vector<1x64xf32> -> vector<8x64xf32>
    %359 = vector.extract_strided_slice %94 {offsets = [0, 0], sizes = [8, 64], strides = [1, 1]} : vector<16x64xf32> to vector<8x64xf32>
    %360 = vector.extract_strided_slice %94 {offsets = [8, 0], sizes = [8, 64], strides = [1, 1]} : vector<16x64xf32> to vector<8x64xf32>
    %361 = arith.addf %359, %360 : vector<8x64xf32>
    %362 = arith.addf %237, %358 : vector<8x64xf32>
    %c0_61 = arith.constant 0 : index
    %c0_62 = arith.constant 0 : index
    %363 = vector.load %arg13[%c0_61, %c0_62] : memref<1x64xf32, #tpu.memory_space<vmem>>, vector<1x64xf32>
    %364 = vector.broadcast %363 : vector<1x64xf32> to vector<8x64xf32>
    %365 = arith.mulf %361, %364 : vector<8x64xf32>
    %366 = arith.addf %362, %365 : vector<8x64xf32>
    %367 = arith.mulf %366, %37 : vector<8x64xf32>
    %c0_63 = arith.constant 0 : index
    %c0_64 = arith.constant 0 : index
    %368 = vector.load %arg14[%c0_63, %c0_64] : memref<64x32xf32, #tpu.memory_space<vmem>>, vector<64x32xf32>
    %cst_65 = arith.constant dense<0.000000e+00> : vector<8x32xf32>
    %369 = tpu.matmul %367, %368, %cst_65 {dimension_numbers = #tpu.dot_dimension_numbers<[1], [0], [0], [1], [0, 0, 1, 1], [], []>} : vector<8x64xf32>, vector<64x32xf32>, vector<8x32xf32> -> vector<8x32xf32>
    %cst_66 = arith.constant dense<0.000000e+00> : vector<8xf32>
    %370 = vector.multi_reduction <add>, %369, %cst_66 [1] : vector<8x32xf32> to vector<8xf32>
    %371 = vector.shape_cast %370 : vector<8xf32> to vector<8x1xf32>
    %cst_67 = arith.constant 3.200000e+01 : f32
    %372 = vector.broadcast %cst_67 : f32 to vector<8x1xf32>
    %373 = arith.divf %371, %372 : vector<8x1xf32>
    %374 = vector.broadcast %373 : vector<8x1xf32> to vector<8x32xf32>
    %375 = arith.subf %369, %374 : vector<8x32xf32>
    %376 = arith.mulf %375, %375 : vector<8x32xf32>
    %cst_68 = arith.constant dense<0.000000e+00> : vector<8xf32>
    %377 = vector.multi_reduction <add>, %376, %cst_68 [1] : vector<8x32xf32> to vector<8xf32>
    %378 = vector.shape_cast %377 : vector<8xf32> to vector<8x1xf32>
    %cst_69 = arith.constant 3.200000e+01 : f32
    %379 = vector.broadcast %cst_69 : f32 to vector<8x1xf32>
    %380 = arith.divf %378, %379 : vector<8x1xf32>
    %381 = vector.broadcast %373 : vector<8x1xf32> to vector<8x32xf32>
    %382 = arith.subf %369, %381 : vector<8x32xf32>
    %cst_70 = arith.constant 9.99999974E-6 : f32
    %383 = vector.broadcast %cst_70 : f32 to vector<8x1xf32>
    %384 = arith.addf %380, %383 : vector<8x1xf32>
    %385 = math.rsqrt %384 : vector<8x1xf32>
    %386 = vector.broadcast %385 : vector<8x1xf32> to vector<8x32xf32>
    %387 = arith.mulf %382, %386 : vector<8x32xf32>
    %c0_71 = arith.constant 0 : index
    %c0_72 = arith.constant 0 : index
    %388 = vector.load %arg15[%c0_71, %c0_72] : memref<1x32xf32, #tpu.memory_space<vmem>>, vector<1x32xf32>
    %389 = vector.broadcast %388 : vector<1x32xf32> to vector<8x32xf32>
    %390 = arith.mulf %387, %389 : vector<8x32xf32>
    %c0_73 = arith.constant 0 : index
    %c0_74 = arith.constant 0 : index
    %391 = vector.load %arg16[%c0_73, %c0_74] : memref<1x32xf32, #tpu.memory_space<vmem>>, vector<1x32xf32>
    %392 = vector.broadcast %391 : vector<1x32xf32> to vector<8x32xf32>
    %393 = arith.addf %390, %392 : vector<8x32xf32>
    %c0_75 = arith.constant 0 : index
    %c0_76 = arith.constant 0 : index
    %394 = vector.load %arg17[%c0_75, %c0_76] : memref<32x128xf32, #tpu.memory_space<vmem>>, vector<32x128xf32>
    %cst_77 = arith.constant dense<0.000000e+00> : vector<8x128xf32>
    %395 = tpu.matmul %393, %394, %cst_77 {dimension_numbers = #tpu.dot_dimension_numbers<[1], [0], [0], [1], [0, 0, 1, 1], [], []>} : vector<8x32xf32>, vector<32x128xf32>, vector<8x128xf32> -> vector<8x128xf32>
    %c0_78 = arith.constant 0 : index
    %c0_79 = arith.constant 0 : index
    %396 = vector.load %arg18[%c0_78, %c0_79] : memref<1x128xf32, #tpu.memory_space<vmem>>, vector<1x128xf32>
    %397 = vector.broadcast %396 : vector<1x128xf32> to vector<8x128xf32>
    %398 = arith.addf %395, %397 : vector<8x128xf32>
    %cst_80 = arith.constant 5.000000e-01 : f32
    %399 = vector.broadcast %cst_80 : f32 to vector<8x128xf32>
    %400 = arith.mulf %399, %398 : vector<8x128xf32>
    %cst_81 = arith.constant 0.707106769 : f32
    %401 = vector.broadcast %cst_81 : f32 to vector<8x128xf32>
    %402 = arith.mulf %398, %401 : vector<8x128xf32>
    %403 = math.absf %402 : vector<8x128xf32>
    %cst_82 = arith.constant 0.327591091 : f32
    %404 = vector.broadcast %cst_82 : f32 to vector<8x128xf32>
    %405 = arith.mulf %404, %403 : vector<8x128xf32>
    %cst_83 = arith.constant 1.000000e+00 : f32
    %406 = vector.broadcast %cst_83 : f32 to vector<8x128xf32>
    %407 = arith.addf %406, %405 : vector<8x128xf32>
    %cst_84 = arith.constant 1.000000e+00 : f32
    %408 = vector.broadcast %cst_84 : f32 to vector<8x128xf32>
    %409 = arith.divf %408, %407 : vector<8x128xf32>
    %cst_85 = arith.constant 1.06140542 : f32
    %410 = vector.broadcast %cst_85 : f32 to vector<8x128xf32>
    %411 = arith.mulf %410, %409 : vector<8x128xf32>
    %cst_86 = arith.constant -1.45315206 : f32
    %412 = vector.broadcast %cst_86 : f32 to vector<8x128xf32>
    %413 = arith.addf %411, %412 : vector<8x128xf32>
    %414 = arith.mulf %413, %409 : vector<8x128xf32>
    %cst_87 = arith.constant 1.42141378 : f32
    %415 = vector.broadcast %cst_87 : f32 to vector<8x128xf32>
    %416 = arith.addf %414, %415 : vector<8x128xf32>
    %417 = arith.mulf %416, %409 : vector<8x128xf32>
    %cst_88 = arith.constant -0.284496725 : f32
    %418 = vector.broadcast %cst_88 : f32 to vector<8x128xf32>
    %419 = arith.addf %417, %418 : vector<8x128xf32>
    %420 = arith.mulf %419, %409 : vector<8x128xf32>
    %cst_89 = arith.constant 0.254829586 : f32
    %421 = vector.broadcast %cst_89 : f32 to vector<8x128xf32>
    %422 = arith.addf %420, %421 : vector<8x128xf32>
    %423 = arith.mulf %422, %409 : vector<8x128xf32>
    %cst_90 = arith.constant 0.000000e+00 : f32
    %424 = vector.broadcast %cst_90 : f32 to vector<8x128xf32>
    %425 = arith.subf %424, %403 : vector<8x128xf32>
    %426 = arith.mulf %425, %403 : vector<8x128xf32>
    %427 = math.exp %426 : vector<8x128xf32>
    %428 = arith.mulf %423, %427 : vector<8x128xf32>
    %cst_91 = arith.constant 1.000000e+00 : f32
    %429 = vector.broadcast %cst_91 : f32 to vector<8x128xf32>
    %430 = arith.subf %429, %428 : vector<8x128xf32>
    %cst_92 = arith.constant 0.000000e+00 : f32
    %431 = vector.broadcast %cst_92 : f32 to vector<8x128xf32>
    %432 = arith.cmpf oge, %402, %431 : vector<8x128xf32>
    %cst_93 = arith.constant 0.000000e+00 : f32
    %433 = vector.broadcast %cst_93 : f32 to vector<8x128xf32>
    %434 = arith.subf %433, %430 : vector<8x128xf32>
    %435 = arith.select %432, %430, %434 : vector<8x128xi1>, vector<8x128xf32>
    %cst_94 = arith.constant 1.000000e+00 : f32
    %436 = vector.broadcast %cst_94 : f32 to vector<8x128xf32>
    %437 = arith.addf %436, %435 : vector<8x128xf32>
    %438 = arith.mulf %400, %437 : vector<8x128xf32>
    %c0_95 = arith.constant 0 : index
    %c0_96 = arith.constant 0 : index
    %439 = vector.load %arg19[%c0_95, %c0_96] : memref<128x32xf32, #tpu.memory_space<vmem>>, vector<128x32xf32>
    %cst_97 = arith.constant dense<0.000000e+00> : vector<8x32xf32>
    %440 = tpu.matmul %438, %439, %cst_97 {dimension_numbers = #tpu.dot_dimension_numbers<[1], [0], [0], [1], [0, 0, 1, 1], [], []>} : vector<8x128xf32>, vector<128x32xf32>, vector<8x32xf32> -> vector<8x32xf32>
    %c0_98 = arith.constant 0 : index
    %c0_99 = arith.constant 0 : index
    %441 = vector.load %arg20[%c0_98, %c0_99] : memref<1x32xf32, #tpu.memory_space<vmem>>, vector<1x32xf32>
    %442 = vector.broadcast %441 : vector<1x32xf32> to vector<8x32xf32>
    %443 = arith.addf %440, %442 : vector<8x32xf32>
    %444 = arith.addf %443, %1 : vector<8x32xf32>
    %c0_100 = arith.constant 0 : index
    %c0_101 = arith.constant 0 : index
    %c0_102 = arith.constant 0 : index
    %445 = vector.load %arg21[%c0_100, %c0_101, %c0_102] : memref<1x8x32xf32, #tpu.memory_space<vmem>>, vector<1x8x32xf32>
    %446 = vector.shape_cast %445 : vector<1x8x32xf32> to vector<8x32xf32>
    %447 = vector.shape_cast %444 : vector<8x32xf32> to vector<1x8x32xf32>
    tpu.vector_store %arg21[%c0_100, %c0_101, %c0_102], %447 {strides = array<i32>} : memref<1x8x32xf32, #tpu.memory_space<vmem>>, vector<1x8x32xf32>,
    return
  }
  func.func @transform_0(%arg0: i32) -> (i32, i32, i32) {
    %c0_i32 = arith.constant 0 : i32
    %c0_i32_0 = arith.constant 0 : i32
    %c0_i32_1 = arith.constant 0 : i32
    return %arg0, %c0_i32, %c0_i32_0 : i32, i32, i32
  }
  func.func @transform_1(%arg0: i32) -> (i32, i32) {
    %c0_i32 = arith.constant 0 : i32
    %c0_i32_0 = arith.constant 0 : i32
    %c0_i32_1 = arith.constant 0 : i32
    return %c0_i32, %c0_i32_0 : i32, i32
  }
  func.func @transform_2(%arg0: i32) -> (i32, i32) {
    %c0_i32 = arith.constant 0 : i32
    %c0_i32_0 = arith.constant 0 : i32
    %c0_i32_1 = arith.constant 0 : i32
    return %c0_i32, %c0_i32_0 : i32, i32
  }
  func.func @transform_3(%arg0: i32) -> (i32, i32) {
    %c0_i32 = arith.constant 0 : i32
    %c0_i32_0 = arith.constant 0 : i32
    %c0_i32_1 = arith.constant 0 : i32
    return %c0_i32, %c0_i32_0 : i32, i32
  }
  func.func @transform_4(%arg0: i32) -> (i32, i32) {
    %c0_i32 = arith.constant 0 : i32
    %c0_i32_0 = arith.constant 0 : i32
    %c0_i32_1 = arith.constant 0 : i32
    return %c0_i32, %c0_i32_0 : i32, i32
  }
  func.func @transform_5(%arg0: i32) -> (i32, i32) {
    %c0_i32 = arith.constant 0 : i32
    %c0_i32_0 = arith.constant 0 : i32
    %c0_i32_1 = arith.constant 0 : i32
    return %c0_i32, %c0_i32_0 : i32, i32
  }
  func.func @transform_6(%arg0: i32) -> (i32, i32) {
    %c0_i32 = arith.constant 0 : i32
    %c0_i32_0 = arith.constant 0 : i32
    %c0_i32_1 = arith.constant 0 : i32
    return %c0_i32, %c0_i32_0 : i32, i32
  }
  func.func @transform_7(%arg0: i32) -> (i32, i32) {
    %c0_i32 = arith.constant 0 : i32
    %c0_i32_0 = arith.constant 0 : i32
    %c0_i32_1 = arith.constant 0 : i32
    return %c0_i32, %c0_i32_0 : i32, i32
  }
  func.func @transform_8(%arg0: i32) -> (i32, i32) {
    %c0_i32 = arith.constant 0 : i32
    %c0_i32_0 = arith.constant 0 : i32
    %c0_i32_1 = arith.constant 0 : i32
    return %c0_i32, %c0_i32_0 : i32, i32
  }
  func.func @transform_9(%arg0: i32) -> (i32, i32) {
    %c0_i32 = arith.constant 0 : i32
    %c0_i32_0 = arith.constant 0 : i32
    %c0_i32_1 = arith.constant 0 : i32
    return %c0_i32, %c0_i32_0 : i32, i32
  }
  func.func @transform_10(%arg0: i32) -> (i32, i32) {
    %c0_i32 = arith.constant 0 : i32
    %c0_i32_0 = arith.constant 0 : i32
    %c0_i32_1 = arith.constant 0 : i32
    return %c0_i32, %c0_i32_0 : i32, i32
  }
  func.func @transform_11(%arg0: i32) -> (i32, i32) {
    %c0_i32 = arith.constant 0 : i32
    %c0_i32_0 = arith.constant 0 : i32
    %c0_i32_1 = arith.constant 0 : i32
    return %c0_i32, %c0_i32_0 : i32, i32
  }
  func.func @transform_12(%arg0: i32) -> (i32, i32) {
    %c0_i32 = arith.constant 0 : i32
    %c0_i32_0 = arith.constant 0 : i32
    %c0_i32_1 = arith.constant 0 : i32
    return %c0_i32, %c0_i32_0 : i32, i32
  }
  func.func @transform_13(%arg0: i32) -> (i32, i32) {
    %c0_i32 = arith.constant 0 : i32
    %c0_i32_0 = arith.constant 0 : i32
    %c0_i32_1 = arith.constant 0 : i32
    return %c0_i32, %c0_i32_0 : i32, i32
  }
  func.func @transform_14(%arg0: i32) -> (i32, i32) {
    %c0_i32 = arith.constant 0 : i32
    %c0_i32_0 = arith.constant 0 : i32
    %c0_i32_1 = arith.constant 0 : i32
    return %c0_i32, %c0_i32_0 : i32, i32
  }
  func.func @transform_15(%arg0: i32) -> (i32, i32) {
    %c0_i32 = arith.constant 0 : i32
    %c0_i32_0 = arith.constant 0 : i32
    %c0_i32_1 = arith.constant 0 : i32
    return %c0_i32, %c0_i32_0 : i32, i32
  }
  func.func @transform_16(%arg0: i32) -> (i32, i32) {
    %c0_i32 = arith.constant 0 : i32
    %c0_i32_0 = arith.constant 0 : i32
    %c0_i32_1 = arith.constant 0 : i32
    return %c0_i32, %c0_i32_0 : i32, i32
  }
  func.func @transform_17(%arg0: i32) -> (i32, i32) {
    %c0_i32 = arith.constant 0 : i32
    %c0_i32_0 = arith.constant 0 : i32
    %c0_i32_1 = arith.constant 0 : i32
    return %c0_i32, %c0_i32_0 : i32, i32
  }
  func.func @transform_18(%arg0: i32) -> (i32, i32) {
    %c0_i32 = arith.constant 0 : i32
    %c0_i32_0 = arith.constant 0 : i32
    %c0_i32_1 = arith.constant 0 : i32
    return %c0_i32, %c0_i32_0 : i32, i32
  }
  func.func @transform_19(%arg0: i32) -> (i32, i32) {
    %c0_i32 = arith.constant 0 : i32
    %c0_i32_0 = arith.constant 0 : i32
    %c0_i32_1 = arith.constant 0 : i32
    return %c0_i32, %c0_i32_0 : i32, i32
  }
  func.func @transform_20(%arg0: i32) -> (i32, i32, i32) {
    %c0_i32 = arith.constant 0 : i32
    %c0_i32_0 = arith.constant 0 : i32
    %c0_i32_1 = arith.constant 0 : i32
    return %arg0, %c0_i32, %c0_i32_0 : i32, i32, i32
  }
}

</mosaic_0001>

<bundles_post_ra>
// kernel: bimamba_encoder.1
= control target key start
LH: loop header
LB: loop body
LE: loop exit
PB: predicated region body
PF: predicated region fallthrough
CT: control target
= control target key end

     0   :  { %s4228_s0 = inlined_call_operand.vmem [shape: f32[2,8,32], index: 0, kind: input, shape index: {}]   ;;  %s4229_s1 = inlined_call_operand.vmem [shape: f32[1,32], index: 1, kind: input, shape index: {}]   ;;  %s4230_s2 = inlined_call_operand.vmem [shape: f32[1,32], index: 2, kind: input, shape index: {}]   ;;  %s4231_s3 = inlined_call_operand.vmem [shape: f32[32,64], index: 3, kind: input, shape index: {}]   ;;  %s4232_s4 = inlined_call_operand.vmem [shape: f32[32,64], index: 4, kind: input, shape index: {}]   ;;  %s4233_s5 = inlined_call_operand.vmem [shape: f32[4,64], index: 5, kind: input, shape index: {}]   ;;  %s4234_s6 = inlined_call_operand.vmem [shape: f32[1,64], index: 6, kind: input, shape index: {}]   ;;  %s4235_s7 = inlined_call_operand.vmem [shape: f32[64,64], index: 7, kind: input, shape index: {}]   ;;  %s4236_s8 = inlined_call_operand.vmem [shape: f32[1,64], index: 8, kind: input, shape index: {}]   ;;  %s4237_s9 = inlined_call_operand.vmem [shape: f32[64,16], index: 9, kind: input, shape index: {}]   ;;  %s4238_s10 = inlined_call_operand.vmem [shape: f32[64,16], index: 10, kind: input, shape index: {}]   ;;  %s4239_s11 = inlined_call_operand.vmem [shape: f32[16,64], index: 11, kind: input, shape index: {}]   ;;  %s4240_s12 = inlined_call_operand.vmem [shape: f32[1,64], index: 12, kind: input, shape index: {}]   ;;  %s4241_s13 = inlined_call_operand.vmem [shape: f32[64,32], index: 13, kind: input, shape index: {}]   ;;  %s4242_s14 = inlined_call_operand.vmem [shape: f32[1,32], index: 14, kind: input, shape index: {}]   ;;  %s4243_s15 = inlined_call_operand.vmem [shape: f32[1,32], index: 15, kind: input, shape index: {}]   ;;  %s4244_s16 = inlined_call_operand.vmem [shape: f32[32,128], index: 16, kind: input, shape index: {}]   ;;  %s4245_s17 = inlined_call_operand.vmem [shape: f32[1,128], index: 17, kind: input, shape index: {}]   ;;  %s4246_s18 = inlined_call_operand.vmem [shape: f32[128,32], index: 18, kind: input, shape index: {}]   ;;  %s4247_s19 = inlined_call_operand.vmem [shape: f32[1,32], index: 19, kind: input, shape index: {}]   ;;  %s4248_s20 = inlined_call_operand.hbm [shape: f32[2,8,32], index: 20, kind: output, shape index: {}]  }
   0x1   :  { %4275 = sst [smem:[#allocation11_spill]] %s4228_s0 }
   0x2   :  { %4276 = sst [smem:[#allocation12_spill]] %s4229_s1 }
   0x3   :  { %4277 = sst [smem:[#allocation13_spill]] %s4230_s2 }
   0x4   :  { %4278 = sst [smem:[#allocation14_spill]] %s4231_s3 }
   0x5   :  { %4279 = sst [smem:[#allocation15_spill]] %s4232_s4 }
   0x6   :  { %4280 = sst [smem:[#allocation16_spill]] %s4233_s5 }
   0x7   :  { %4281 = sst [smem:[#allocation17_spill]] %s4234_s6 }
   0x8   :  { %25 = vsyncpa [#allocation3], 0 }
   0x9   :  { %27 = vsyncpa [#allocation3 + $0x1], 0  ;;  %s3205_s1 = smov 0   ;;  %s3207_s22 = smov 0  }
   0xa   :  { %s3209_s23 = smov 0   ;;  %s3211_s24 = smov 0  }
   0xb LB: > { %4282 = sst [smem:[#allocation5_spill]] %s3066_s1  ;;  %s3226_s2 = sadd.s32 4294967295, %s3078_s24   ;;  %s3078_s24 = sphi %s3211_s24, %s4316_s24   ;;  %s3074_s23 = sphi %s3209_s23, %s4318_s23   ;;  %s3070_s22 = sphi %s3207_s22, %s4320_s22   ;;  %s3066_s1 = sphi %s3205_s1, %s4319_s1  }
   0xc   : > { %4283 = sst [smem:[#allocation6_spill]] %s3074_s23  ;;  %s2558_s25 = sadd.s32 4294967294, %s3078_s24  }
   0xd   : > { %4284 = sst [smem:[#allocation7_spill]] %s3078_s24  ;;  %s3230_s3 = sadd.s32 1, %s3078_s24  }
   0xe   : > { %4285 = sst [smem:[#allocation8_spill]] %s3230_s3  ;;  %s465_s26 = sadd.s32 1, %s3074_s23 }
   0xf   : > { %s462_s27 = ssub.s32 %s3078_s24, %s3230_s3  ;;  %p475_p0 = scmp.ne.s32.totalorder %s3074_s23, %s3070_s22 }
  0x10   : > { %p463_p1 = scmp.eq.s32.totalorder %s462_s27, 0  ;;  %p476_p2 = scmp.eq.s32.totalorder %s3226_s2, 1 }
  0x11   : > { %p481_p3 = scmp.ne.s32.totalorder %s3070_s22, %s3066_s1  ;;  %p482_p4 = scmp.eq.s32.totalorder %s2558_s25, 1 }
  0x12   : > { %s3241_s28 = scalar_select %p463_p1, %s3074_s23, %s465_s26  }
  0x13   : > { %p3243_p5 = por %p476_p2, %p475_p0  ;;  %p3247_p6 = por %p482_p4, %p481_p3 }
  0x14   : > { %4286 = sst [smem:[#allocation9_spill]] %s3241_s28  ;;  %p2561_p7 = scmp.ge.s32.totalorder %s3078_s24, 1 }
  0x15   : > { %s4288_s29 = scalar_select %p3247_p6, 1, 0 }
  0x16   : > { %p564_p8 = scmp.lt.s32.totalorder %s3078_s24, 3 }
  0x17   : > { %4289 = sst [smem:[#allocation10_spill]] %s4288_s29 }
  0x18   : > { %p565_p9 = pnand %p2561_p7, %p564_p8 }
  0x19   : > { %p621_p10 = scmp.lt.s32.totalorder (!%p565_p9), %s3226_s2, 1  ;;  %s4290_s26 = sld [smem:[#allocation11_spill]] (!%p565_p9) }
  0x1a   : > { %568 = sbr.rel (%p565_p9) target bundleno = 2243 (0x8c3), region = 100  ;;  %s4291_s23 = sld [smem:[#allocation14_spill]] (!%p565_p9) }
  0x1b   : > { %s4293_s21 = sld [smem:[#allocation12_spill]] (!%p565_p9)  ;;  %s618_s25 = sand.u32 (!%p565_p9), 1, %s3070_s22  }
  0x1c   : > { %s4295_s29 = sld [smem:[#allocation15_spill]] (!%p565_p9) }
  0x1d   : > { %s4296_s5 = sld [smem:[#allocation16_spill]] (!%p565_p9) }
  0x1e   : > { %s4297_s6 = sld [smem:[#allocation17_spill]] (!%p565_p9) }
  0x1f   : > { %s622_s30 = scalar_select %p621_p10, %s3226_s2, 1  ;;  %vm626_vm0 = vcmask 261120   ;;  %v4258_v8 = vmov 0.0   ;;  %vm3081_vm1 = vmmov 0   ;;  %v928_v25 = vld [vmem:[%s4235_s7 + $0x38] sm:$0xff]  ;;  %v927_v27 = vld [vmem:[%s4235_s7 + $0x30] sm:$0xff]  ;;  %v824_v42 = vlaneseq }
  0x20   : > { %s4292_s3 = smov %s4291_s23  ;;  %v660_v7 = vld [vmem:[%s4291_s23 + $0x18] sm:$0xff]  ;;  %2658 = vmatprep.subr.mxu0 %v4258_v8  ;;  %2666 = vmatprep.mubr.msk.f32.mxu0 %vm3081_vm1, %v4258_v8  ;;  %s4294_s23 = sld [smem:[#allocation13_spill]]  ;;  %v1042_v28 = vld [vmem:[%s4237_s9 + $0x30] sm:$0xff]  ;;  %v926_v29 = vld [vmem:[%s4235_s7 + $0x28] sm:$0xff]  ;;  %vm822_vm2 = vcmask 1042432   ;;  %vm844_vm3 = vcmask 1046528  }
  0x21   : > { %s2563_s0 = sshll.u32 %s622_s30, 3  ;;  %v659_v9 = vld [vmem:[%s4292_s3 + $0x10] sm:$0xff]  ;;  %2659 = vmatpush3.msra.mxu0 %v660_v7  ;;  %v658_v10 = vld [vmem:[%s4292_s3 + $0x8] sm:$0xff]  ;;  %v657_v11 = vld [vmem:[%s4292_s3] sm:$0xff]  ;;  %v3362_v43 = vshrl.u32 %v824_v42, 7  ;;  %vm858_vm4 = vcmask 1045504  }
  0x22   : > { %s3258_s27 = scalar_lea.vmem %s4290_s26, %s2563_s0  ;;  %2660 = vmatprep.subr.mxu0 %v4258_v8  ;;  %v2564_v16 = vld [vmem:[%s4293_s21] ss:$0 sm:$0xff]  ;;  %v737_v21 = vld [vmem:[%s4295_s29 + $0x18] sm:$0xff]  ;;  %v736_v22 = vld [vmem:[%s4295_s29 + $0x10] sm:$0xff]  ;;  %vm872_vm5 = vcmask 1044480   ;;  %vm936_vm6 = vcmask 523264  }
  0x23   : > { %v625_v0 = vld [vmem:[%s3258_s27] sm:$0xff]  ;;  %2661 = vmatpush3.msra.mxu0 %v659_v9  ;;  %v735_v23 = vld [vmem:[%s4295_s29 + $0x8] sm:$0xff]  ;;  %v1043_v26 = vld [vmem:[%s4237_s9 + $0x38] sm:$0xff]  ;;  %v3365_v44 = vsub.s32 1, %v3362_v43  ;;  %v3368_v45 = vsub.s32 2, %v3362_v43  ;;  %v3374_v47 = vsub.s32 0, %v3362_v43 }
  0x24   : > { %v627_v1 = vsel %vm626_vm0, %v625_v0, 0.0  ;;  %2662 = vmatprep.subr.mxu0 %v4258_v8  ;;  %v734_v24 = vld [vmem:[%s4295_s29] sm:$0xff]  ;;  %2699 = vmatprep.subr.mxu1 %v1043_v26  ;;  %v1041_v30 = vld [vmem:[%s4237_s9 + $0x28] sm:$0xff]  ;;  %v924_v33 = vld [vmem:[%s4235_s7 + $0x18] sm:$0xff]  ;;  %v3377_v48 = vsub.s32 3, %v3362_v43  ;;  %vm1706_vm7 = vcmask 1040384  }
  0x25   : > { %628 = vadd.xlane.f32.xlu0 %v627_v1  ;;  %2663 = vmatpush3.msra.mxu0 %v658_v10  ;;  %v925_v31 = vld [vmem:[%s4235_s7 + $0x20] sm:$0xff]  ;;  %v1039_v34 = vld [vmem:[%s4237_s9 + $0x18] sm:$0xff]  ;;  %v923_v35 = vld [vmem:[%s4235_s7 + $0x10] sm:$0xff]  ;;  %vm1708_vm8 = vcmask 1041408   ;;  %vm1711_vm9 = vcmask 1043456   ;;  %s2562_s26 = sshll.u32 %s618_s25, 3 }
  0x26   : > { %2664 = vmatprep.subr.mxu0 %v4258_v8  ;;  %v2565_v18 = vld [vmem:[%s4294_s23] ss:$0 sm:$0xff]  ;;  %2700 = vmatpush3.msra.mxu1 %v1043_v26  ;;  %v1038_v36 = vld [vmem:[%s4237_s9 + $0x10] sm:$0xff]  ;;  %v922_v37 = vld [vmem:[%s4235_s7 + $0x8] sm:$0xff]  ;;  %s2584_s30 = sshll.u32 %s3226_s2, 7  ;;  %s620_s0 = scalar_lea.vmem [#allocation2], %s2562_s26 }
  0x27   : > { %2665 = vmatpush3.msra.mxu0 %v657_v11  ;;  %2701 = vmatprep.subr.mxu1 %v1042_v28  ;;  %v1040_v32 = vld [vmem:[%s4237_s9 + $0x20] sm:$0xff]  ;;  %v1037_v38 = vld [vmem:[%s4237_s9 + $0x8] sm:$0xff]  ;;  %v3358_v41 = vld [vmem:[%s4238_s10 + $0x38] sm:$0xff]  ;;  %s2499_s3 = sshll.u32 %s620_s0, 4  ;;  %s2497_s24 = scalar_lea.hbm %s4248_s20, %s2584_s30  ;;  %s2500_s3 = int_to_ptr.vmem [resolvable:$true] %s2499_s3 }
  0x28   : > { %2669 = vmatprep.subr.mxu0 %v4258_v8  ;;  %2702 = vmatpush3.msra.mxu1 %v1042_v28  ;;  %v921_v39 = vld [vmem:[%s4235_s7] sm:$0xff]  ;;  %s3099_s2 = smov [#allocation2]  }
  0x29   : > { %2703 = vmatprep.subr.mxu1 %v1041_v30  ;;  %v1036_v40 = vld [vmem:[%s4237_s9] sm:$0xff]  ;;  %s3022_s26 = sshll.u32 %s3099_s2, 4  ;;  %s3023_s26 = int_to_ptr.vmem [resolvable:$false] %s3022_s26 }
  0x2a   : > { %2704 = vmatpush3.msra.mxu1 %v1041_v30  ;;  %v815_v46 = vld [vmem:[%s4296_s5] sm:$0xf]  ;;  %s2486_s5 = scalar_lea.sflag [#allocation3], %s618_s25  ;;  %s3024_s23 = scalar_lea.vmem %s3023_s26, 256 }
  0x2b   : > { %2705 = vmatprep.subr.mxu1 %v1040_v32  ;;  %v839_v49 = vrot.slane %v815_v46, %v3365_v44  ;;  %v853_v50 = vrot.slane %v815_v46, %v3368_v45  ;;  %v827_v51 = vrot.slane %v815_v46, %v3374_v47  ;;  %v867_v52 = vrot.slane %v815_v46, %v3377_v48  ;;  %v2568_v62 = vld [vmem:[%s4297_s6] ss:$0 sm:$0xff]  ;;  %s3018_s6 = scalar_lea.vmem %s2500_s3, 128  ;;  %p3025_p0 = scmp.lt.s32.totalorder %s2500_s3, %s3023_s26 }
  0x2c   : > { %2706 = vmatpush3.msra.mxu1 %v1040_v32  ;;  %p3019_p11 = scmp.ne.s32.totalorder %s2500_s3, %s3018_s6  ;;  %p3026_p1 = scmp.lt.s32.totalorder %s3024_s23, %s3018_s6 }
  0x2d   : > { %2707 = vmatprep.subr.mxu1 %v1039_v34  ;;  %v881_v55 = vmul.f32 0.0, %v853_v50  ;;  %v890_v56 = vmul.f32 0.0, %v839_v49  ;;  %v899_v60 = vmul.f32 0.0, %v827_v51 }
  0x2e   : > { %2708 = vmatpush3.msra.mxu1 %v1039_v34  ;;  %p3020_p12 = pnand %p3019_p11, %p3243_p5  ;;  %p3027_p2 = por %p3026_p1, %p3025_p0 }
  0x2f   : > { %2709 = vmatprep.subr.mxu1 %v1038_v36  ;;  %v885_v10 = vrot.slane %v881_v55, 1  ;;  %v903_v26 = vrot.slane %v899_v60, 3  ;;  %v1125_v55 = vld [vmem:[%s4238_s10 + $0x30] sm:$0xff]  ;;  %v1119_v60 = vld [vmem:[%s4238_s10] sm:$0xff] }
  0x30   : > { %2710 = vmatpush3.msra.mxu1 %v1038_v36  ;;  %p3021_p13 = pneg %p3020_p12 }
  0x31   : > { %2711 = vmatprep.subr.mxu1 %v1037_v38 }
  0x32   : > { %2712 = vmatpush3.msra.mxu1 %v1037_v38  ;;  %p3028_p3 = pnand %p3027_p2, %p3021_p13 }
  0x33   : > { %2713 = vmatprep.subr.mxu1 %v1036_v40 }
  0x34   : > { %2714 = vmatpush3.msra.mxu1 %v1036_v40 }
  0x35   : > { %2737 = vmatprep.subr.mxu1 %v4258_v8 }
  0xae   : > { %v629_v2 = vpop.xlane.xlu0 %628 }
  0xaf   : > { %v631_v3 = vmul.f32 0.03125, %v629_v2 }
  0xb1   : > { %v632_v4 = vsub.f32 %v625_v0, %v631_v3 }
  0xb3   : > { %v633_v5 = vmul.f32 %v632_v4, %v632_v4 }
  0xb5   : > { %v634_v6 = vsel %vm626_vm0, %v633_v5, 0.0 }
  0xb6   : > { %635 = vadd.xlane.f32.xlu0 %v634_v6 }
 0x13f   : > { %v636_v12 = vpop.xlane.xlu0 %635 }
 0x140   : > { %v637_v13 = vmul.f32 0.03125, %v636_v12 }
 0x142   : > { %v638_v14 = vadd.f32 1e-05, %v637_v13 }
 0x144   : > { %2925 = vrsqrt.f32 %v638_v14 }
 0x151   : > { %v2926_v15 = vpop.eup %2925 }
 0x152   : > { %v640_v17 = vmul.f32 %v2926_v15, %v632_v4 }
 0x154   : > { %v648_v19 = vmul.f32 %v2564_v16, %v640_v17 }
 0x156   : > { %v656_v20 = vadd.f32 %v2565_v18, %v648_v19  ;;  %v894_v18 = vrot.slane %v890_v56, 2  ;;  %v1124_v56 = vld [vmem:[%s4238_s10 + $0x28] sm:$0xff] }
 0x158   : > { %2667 = vmatmul.mubr.msk.f32.vlgmr.msra.gmra.mxu0 %vm626_vm0, %v656_v20 }
 0x159   : > { %2670 = vmatpush3.msra.mxu0 %v737_v21  ;;  %2677 = vmatprep.mubr.msk.f32.mxu0 %vm3081_vm1, %v4258_v8 }
 0x15a   : > { %2671 = vmatprep.subr.mxu0 %v4258_v8 }
 0x15b   : > { %2672 = vmatpush3.msra.mxu0 %v736_v22 }
 0x15c   : > { %2673 = vmatprep.subr.mxu0 %v4258_v8 }
 0x15d   : > { %2674 = vmatpush3.msra.mxu0 %v735_v23 }
 0x15e   : > { %2675 = vmatprep.subr.mxu0 %v4258_v8 }
 0x15f   : > { %2676 = vmatpush3.msra.mxu0 %v734_v24 }
 0x160   : > { %2678 = vmatmul.mubr.msk.f32.vlgmr.msra.gmra.mxu0 %vm626_vm0, %v656_v20  ;;  %2680 = vmatprep.subr.mxu0 %v928_v25 }
 0x161   : > { %2681 = vmatpush3.msra.mxu0 %v928_v25 }
 0x162   : > { %2682 = vmatprep.subr.mxu0 %v927_v27 }
 0x163   : > { %2683 = vmatpush3.msra.mxu0 %v927_v27 }
 0x164   : > { %2684 = vmatprep.subr.mxu0 %v926_v29 }
 0x165   : > { %2685 = vmatpush3.msra.mxu0 %v926_v29 }
 0x166   : > { %2686 = vmatprep.subr.mxu0 %v925_v31 }
 0x167   : > { %2687 = vmatpush3.msra.mxu0 %v925_v31 }
 0x168   : > { %2688 = vmatprep.subr.mxu0 %v924_v33 }
 0x169   : > { %2689 = vmatpush3.msra.mxu0 %v924_v33 }
 0x16a   : > { %2690 = vmatprep.subr.mxu0 %v923_v35 }
 0x16b   : > { %2691 = vmatpush3.msra.mxu0 %v923_v35 }
 0x16c   : > { %2692 = vmatprep.subr.mxu0 %v922_v37 }
 0x16d   : > { %2693 = vmatpush3.msra.mxu0 %v922_v37 }
 0x16e   : > { %2694 = vmatprep.subr.mxu0 %v921_v39 }
 0x16f   : > { %2695 = vmatpush3.msra.mxu0 %v921_v39 }
 0x170   : > { %2718 = vmatprep.subr.mxu0 %v3358_v41 }
 0x218   : > { %v730_v53 = vpop.f32.mrf.mxu0 }
 0x219   : > { %v820_v54 = vrot.slane %v730_v53, 5  ;;  %v878_v57 = vmul.f32 %v867_v52, %v730_v53  ;;  %v880_v58 = vmul.f32 %v853_v50, %v730_v53  ;;  %v889_v59 = vmul.f32 %v839_v49, %v730_v53 }
 0x21a   : > { %v2668_v61 = vpop.f32.mrf.mxu0  ;;  %v898_v11 = vmul.f32 %v827_v51, %v730_v53 }
 0x21b   : > { %v823_v63 = vsel %vm822_vm2, 0.0, %v820_v54  ;;  %v841_v0 = vmul.f32 %v839_v49, %v820_v54  ;;  %v855_v1 = vmul.f32 %v853_v50, %v820_v54  ;;  %v869_v2 = vmul.f32 %v867_v52, %v820_v54 }
 0x21c   : > { %v828_v3 = vmul.f32 %v827_v51, %v823_v63  ;;  %v840_v4 = vmul.f32 %v839_v49, %v823_v63  ;;  %v854_v5 = vmul.f32 %v853_v50, %v823_v63  ;;  %v868_v6 = vmul.f32 %v867_v52, %v823_v63 }
 0x21d   : > { %v846_v7 = vrot.slane %v841_v0, 1  ;;  %v860_v9 = vrot.slane %v855_v1, 2  ;;  %v879_v15 = vadd.f32 %v2568_v62, %v878_v57  ;;  %v884_v16 = vrot.slane %v880_v58, 1  ;;  %v1123_v57 = vld [vmem:[%s4238_s10 + $0x20] sm:$0xff]  ;;  %v1121_v58 = vld [vmem:[%s4238_s10 + $0x10] sm:$0xff] }
 0x21e   : > { %v835_v12 = vadd.f32 %v2568_v62, %v828_v3  ;;  %v845_v13 = vrot.slane %v840_v4, 1  ;;  %v859_v14 = vrot.slane %v854_v5, 2  ;;  %v893_v17 = vrot.slane %v889_v59, 2  ;;  %v1120_v59 = vld [vmem:[%s4238_s10 + $0x8] sm:$0xff] }
 0x21f   : > { %v873_v20 = vrot.slane %v868_v6, 3  ;;  %v874_v21 = vrot.slane %v869_v2, 3  ;;  %v886_v24 = vsel %vm844_vm3, %v884_v16, %v885_v10  ;;  %v902_v25 = vrot.slane %v898_v11, 3  ;;  %v2569_v11 = vld [vmem:[%s4236_s8] ss:$0 sm:$0xff] }
 0x220   : > { %v847_v19 = vsel %vm844_vm3, %v845_v13, %v846_v7  ;;  %v3388_v22 = vpop.f32.mrf.mxu0  ;;  %v888_v27 = vadd.f32 %v886_v24, %v879_v15  ;;  %v861_v29 = vsel %vm858_vm4, %v859_v14, %v860_v9  ;;  %v895_v30 = vsel %vm858_vm4, %v893_v17, %v894_v18 }
 0x221   : > { %v849_v23 = vadd.f32 %v847_v19, %v835_v12  ;;  %v875_v33 = vsel %vm872_vm5, %v873_v20, %v874_v21  ;;  %v904_v34 = vsel %vm872_vm5, %v902_v25, %v903_v26  ;;  %v4260_v3 = vmov 15  }
 0x222   : > { %v2679_v28 = vpop.f32.mrf.mxu0  ;;  %v897_v32 = vadd.f32 %v895_v30, %v888_v27  ;;  %v4274_v4 = vmov 13   ;;  %v3084_v6 = vmov 14   ;;  %v4270_v7 = vmov 4  }
 0x223   : > { %v863_v31 = vadd.f32 %v861_v29, %v849_v23  ;;  %v4268_v9 = vmov 0   ;;  %v4264_v10 = vmov 8   ;;  %v4265_v12 = vmov 1  }
 0x224   : > { %v906_v36 = vadd.f32 %v904_v34, %v897_v32  ;;  %v4271_v13 = vmov 7   ;;  %v4262_v16 = vmov 12   ;;  %v4266_v17 = vmov 3  }
 0x225   : > { %v877_v35 = vadd.f32 %v875_v33, %v863_v31  ;;  %v4263_v20 = vmov 2   ;;  %v3093_v21 = vmov 9   ;;  %v3094_v24 = vmov 11  }
 0x226   : > { %v908_v38 = vsub.f32 0.0, %v906_v36  ;;  %v4261_v25 = vmov 6   ;;  %v3096_v28 = vmov 10   ;;  %v3097_v33 = vmov 5  }
 0x227   : > { %v907_v37 = vsub.f32 0.0, %v877_v35 }
 0x228   : > { %v911_v40 = vmul.f32 1.442695, %v908_v38 }
 0x229   : > { %v909_v39 = vmul.f32 1.442695, %v907_v37 }
 0x22b   : > { %2927 = vpow2.f32 %v909_v39 }
 0x22c   : > { %2929 = vpow2.f32 %v911_v40  ;;  %v3098_v40 = vmov 1966171168  }
 0x238   : > { %v2928_v42 = vpop.eup %2927 }
 0x239   : > { %v2930_v46 = vpop.eup %2929  ;;  %v913_v49 = vadd.f32 1.0, %v2928_v42  ;;  %v1271_v42 = vunpack.c.l.s4 %v3098_v40 }
 0x23a   : > { %v914_v50 = vadd.f32 1.0, %v2930_v46 }
 0x23b   : > { %2931 = vrcp.f32 %v913_v49 }
 0x23c   : > { %2933 = vrcp.f32 %v914_v50  ;;  %v1272_v50 = vunpack.c.0.s8 %v1271_v42 }
 0x248   : > { %v2932_v51 = vpop.eup %2931 }
 0x249   : > { %v2934_v52 = vpop.eup %2933  ;;  %v3395_v53 = vmul.f32 %v2932_v51, %v877_v35 }
 0x24a   : > { %v3397_v54 = vmul.f32 %v2934_v52, %v906_v36  ;;  %v3525_v52 = vsub.s32 %v1272_v50, %v3362_v43 }
 0x24b   : > { %2696 = vmatprep.mubr.msk.f32.mxu0 %vm936_vm6, %v3395_v53  ;;  %2715 = vmatprep.mubr.msk.f32.mxu1 %vm936_vm6, %v3395_v53 }
 0x24c   : > { %2697 = vmatmul.mubr.msk.f32.vlgmr.msra.gmra.mxu0 %vm936_vm6, %v3397_v54  ;;  %2716 = vmatmul.mubr.msk.f32.vlgmr.msra.gmra.mxu1 %vm936_vm6, %v3397_v54 }
 0x24d   : > { %2719 = vmatpush3.msra.mxu0 %v3358_v41  ;;  %2734 = vmatprep.mubr.msk.f32.mxu0 %vm936_vm6, %v3395_v53  ;;  %v1122_v41 = vld [vmem:[%s4238_s10 + $0x18] sm:$0xff] }
 0x24e   : > { %2720 = vmatprep.subr.mxu0 %v1125_v55  ;;  %2753 = vmatprep.mubr.msk.f32.mxu1 %vm3081_vm1, %v4258_v8 }
 0x24f   : > { %2721 = vmatpush3.msra.mxu0 %v1125_v55 }
 0x250   : > { %2722 = vmatprep.subr.mxu0 %v1124_v56 }
 0x251   : > { %2723 = vmatpush3.msra.mxu0 %v1124_v56 }
 0x252   : > { %2724 = vmatprep.subr.mxu0 %v1123_v57 }
 0x253   : > { %2725 = vmatpush3.msra.mxu0 %v1123_v57 }
 0x254   : > { %2726 = vmatprep.subr.mxu0 %v1122_v41 }
 0x255   : > { %2727 = vmatpush3.msra.mxu0 %v1122_v41 }
 0x256   : > { %2728 = vmatprep.subr.mxu0 %v1121_v58 }
 0x257   : > { %2729 = vmatpush3.msra.mxu0 %v1121_v58 }
 0x258   : > { %2730 = vmatprep.subr.mxu0 %v1120_v59 }
 0x259   : > { %2731 = vmatpush3.msra.mxu0 %v1120_v59 }
 0x25a   : > { %2732 = vmatprep.subr.mxu0 %v1119_v60 }
 0x25b   : > { %2733 = vmatpush3.msra.mxu0 %v1119_v60 }
 0x25c   : > { %2735 = vmatmul.mubr.msk.f32.vlgmr.msra.gmra.mxu0 %vm936_vm6, %v3397_v54  ;;  %2756 = vmatprep.subr.mxu0 %v4258_v8 }
 0x25d   : > { %2764 = vmatprep.mubr.msk.f32.mxu0 %vm3081_vm1, %v4258_v8 }
 0x30c   : > { %v2717_v61 = vpop.f32.mrf.mxu1  ;;  %v2698_v63 = vpop.f32.mrf.mxu0 }
 0x30d   : > { %v3459_v14 = vadd.f32 %v2698_v63, %v2569_v11 }
 0x30e   : > { %v1110_v62 = vpop.f32.mrf.mxu1  ;;  %v1009_v0 = vpop.f32.mrf.mxu0 }
 0x30f   : > { %1202 = vxpose.xlu1.b32.start [1/2] (short) (narrow) %v1110_v62, 16  ;;  %v1021_v18 = vand.u32 2147483647, %v3459_v14  ;;  %v3482_v27 = vadd.f32 %v2569_v11, %v1009_v0  ;;  %v1019_v39 = vmax.f32 %v3459_v14, 0.0 }
 0x311   : > { %v1023_v19 = vsub.f32 0.0, %v1021_v18  ;;  %v1020_v29 = vand.u32 2147483647, %v3482_v27  ;;  %v1018_v59 = vmax.f32 %v3482_v27, 0.0 }
 0x313   : > { %1203 = vxpose.xlu1.b32.end [2/2] (short) (narrow) %v2717_v61, 16  ;;  %v1026_v23 = vmul.f32 1.442695, %v1023_v19  ;;  %v1022_v31 = vsub.f32 0.0, %v1020_v29 }
 0x315   : > { %2935 = vpow2.f32 %v1026_v23  ;;  %v1024_v34 = vmul.f32 1.442695, %v1022_v31 }
 0x31c   : > { %v2736_v1 = vpop.f32.mrf.mxu0 }
 0x31e   : > { %v1193_v2 = vpop.f32.mrf.mxu0 }
 0x31f   : > { %1234 = vxpose.xlu0.b32.start [1/2] (short) (narrow) %v1193_v2, 16  ;;  %v3552_v2 = vld [vmem:[%s4239_s11] sm:$0xff] }
 0x322   : > { %v2936_v30 = vpop.eup %2935 }
 0x323   : > { %1235 = vxpose.xlu0.b32.end [2/2] (short) (narrow) %v2736_v1, 16  ;;  %v1029_v32 = vadd.f32 1.0, %v2936_v30 }
 0x325   : > { %2937 = vlog2.f32 %v1029_v32 }
 0x326   : > { %2939 = vpow2.f32 %v1024_v34 }
 0x331   : > { %2860 = vset.pattern.permute.xlu1 %v4260_v3 }
 0x332   : > { %v2938_v36 = vpop.eup %2937 }
 0x333   : > { %v2940_v37 = vpop.eup %2939  ;;  %v1033_v38 = vmul.f32 0.6931472, %v2938_v36 }
 0x334   : > { %v1028_v46 = vadd.f32 1.0, %v2940_v37 }
 0x335   : > { %v3516_v49 = vadd.f32 %v1033_v38, %v1019_v39 }
 0x336   : > { %2941 = vlog2.f32 %v1028_v46 }
 0x337   : > { %v1717_v51 = vcombine.high %v3516_v49, %v3516_v49  ;;  %v1724_v23 = vrot.slane %v3516_v49, %v3525_v52 }
 0x339   : > { %v1731_v55 = vrot.slane %v1717_v51, %v3525_v52  ;;  %v1732_v32 = vcombine.high %v1724_v23, %v1724_v23 }
 0x33b   : > { %v1733_v56 = vcombine.high %v1731_v55, %v1731_v55  ;;  %v1747_v61 = vrot.slane %v1731_v55, %v3525_v52  ;;  %v3588_v42 = vrot.slane %v1732_v32, %v3525_v52 }
 0x33d   : > { %v1761_v41 = vrot.slane %v1733_v56, %v3525_v52  ;;  %v1763_v0 = vcombine.high %v1747_v61, %v1747_v61  ;;  %v3580_v37 = vrot.slane %v1747_v61, %v3374_v47 }
 0x33f   : > { %v1765_v60 = vcombine.high %v1761_v41, %v1761_v41  ;;  %v3559_v11 = vrot.slane %v1763_v0, %v3374_v47  ;;  %v3572_v30 = vrot.slane %v1761_v41, %v3374_v47  ;;  %v1814_v50 = vmul.f32 %v3580_v37, %v3552_v2 }
 0x340   : > { %v1764_v41 = vcombine.high %v3588_v42, %v3588_v42 }
 0x341   : > { %v3545_v63 = vrot.slane %v1765_v60, %v3374_v47  ;;  %v1818_v27 = vmul.f32 %v3559_v11, %v3552_v2  ;;  %v1816_v38 = vmul.f32 %v3572_v30, %v3552_v2 }
 0x343   : > { %v2942_v57 = vpop.eup %2941  ;;  %v1846_v34 = vmul.f32 1.442695, %v1818_v27  ;;  %v1842_v51 = vmul.f32 1.442695, %v1816_v38 }
 0x344   : > { %v1031_v58 = vmul.f32 0.6931472, %v2942_v57  ;;  %v3601_v57 = vmul.f32 %v3516_v49, %v3397_v54  ;;  %v3611_v49 = vrot.slane %v1764_v41, %v3374_v47 }
 0x346   : > { %v3540_v62 = vadd.f32 %v1031_v58, %v1018_v59  ;;  %v4267_v58 = vsub.s32 7, %v3362_v43  ;;  %v1838_v59 = vmul.f32 1.442695, %v1814_v50 }
 0x348   : > { %v1276_v1 = vrot.slane %v3540_v62, %v3525_v52  ;;  %v1269_v32 = vcombine.high %v3540_v62, %v3540_v62 }
 0x34a   : > { %v1292_v14 = vrot.slane %v1276_v1, %v3525_v52  ;;  %v1284_v18 = vcombine.high %v1276_v1, %v1276_v1  ;;  %v3616_v1 = vrot.slane %v3601_v57, %v4267_v58 }
 0x34c   : > { %2863 = vset.pattern.permute.xlu0 %v4274_v4  ;;  %v3569_v29 = vrot.slane %v1292_v14, %v3374_v47  ;;  %v1306_v31 = vrot.slane %v1284_v18, %v3525_v52  ;;  %v1314_v40 = vcombine.high %v1292_v14, %v1292_v14  ;;  %v4269_v18 = vsub.s32 6, %v3362_v43 }
 0x34e   : > { %v1358_v36 = vmul.f32 %v3569_v29, %v3552_v2  ;;  %v3585_v39 = vrot.slane %v1306_v31, %v3374_v47  ;;  %v3597_v56 = vrot.slane %v1314_v40, %v3374_v47  ;;  %v4273_v40 = vsub.s32 5, %v3362_v43 }
 0x350   : > { %v1374_v46 = vmul.f32 1.442695, %v1358_v36  ;;  %v1360_v55 = vmul.f32 %v3585_v39, %v3552_v2  ;;  %v1362_v0 = vmul.f32 %v3597_v56, %v3552_v2 }
 0x352   : > { %v1378_v60 = vmul.f32 1.442695, %v1360_v55 }
 0x38b   : > { %v3440_v5 = vpop.trf.xlu1 }
 0x38c   : > { %1859 = vperm.xlu1 %2860, %v3440_v5   ;;  %1933 = vperm.xlu0 %2863, %v3440_v5  }
 0x38f   : > { %v3461_v15 = vpop.trf.xlu1 }
 0x390   : > { %2861 = vset.pattern.permute.xlu1 %v3084_v6  ;;  %2870 = vset.pattern.permute.xlu0 %v4270_v7 }
 0x391   : > { %1896 = vperm.xlu1 %2861, %v3440_v5   ;;  %1563 = vperm.xlu0 %2870, %v3440_v5  }
 0x395   : > { %2862 = vset.pattern.permute.xlu1 %v4268_v9  ;;  %2873 = vset.pattern.permute.xlu0 %v4264_v10 }
 0x396   : > { %1412 = vperm.xlu1 %2862, %v3440_v5   ;;  %2118 = vperm.xlu0 %2873, %v3440_v5  }
 0x39a   : > { %2864 = vset.pattern.permute.xlu1 %v4265_v12  ;;  %2875 = vset.pattern.permute.xlu0 %v4271_v13 }
 0x39b   : > { %1452 = vperm.xlu1 %2864, %v3440_v5   ;;  %1674 = vperm.xlu0 %2875, %v3440_v5   ;;  %v3476_v26 = vpop.trf.xlu0 }
 0x39f   : > { %2865 = vset.pattern.permute.xlu1 %v4262_v16  ;;  %2884 = vset.pattern.permute.xlu0 %v4266_v17  ;;  %v3497_v35 = vpop.trf.xlu0 }
 0x3a0   : > { %1970 = vperm.xlu1 %2865, %v3440_v5   ;;  %1530 = vperm.xlu0 %2884, %v3461_v15  }
 0x3a4   : > { %2866 = vset.pattern.permute.xlu1 %v4263_v20  ;;  %2887 = vset.pattern.permute.xlu0 %v3093_v21 }
 0x3a5   : > { %1489 = vperm.xlu1 %2866, %v3440_v5   ;;  %2085 = vperm.xlu0 %2887, %v3461_v15  }
 0x3a9   : > { %2867 = vset.pattern.permute.xlu1 %v3094_v24  ;;  %2890 = vset.pattern.permute.xlu0 %v4261_v25 }
 0x3aa   : > { %2007 = vperm.xlu1 %2867, %v3440_v5   ;;  %1641 = vperm.xlu0 %2890, %v3461_v15  }
 0x3ae   : > { %2868 = vset.pattern.permute.xlu1 %v4266_v17  ;;  %2893 = vset.pattern.permute.xlu0 %v4265_v12 }
 0x3af   : > { %1526 = vperm.xlu1 %2868, %v3440_v5   ;;  %1466 = vperm.xlu0 %2893, %v3476_v26  }
 0x3b3   : > { %2869 = vset.pattern.permute.xlu1 %v3096_v28  ;;  %2896 = vset.pattern.permute.xlu0 %v4263_v20 }
 0x3b4   : > { %2044 = vperm.xlu1 %2869, %v3440_v5   ;;  %1503 = vperm.xlu0 %2896, %v3476_v26  }
 0x3b8   : > { %2871 = vset.pattern.permute.xlu1 %v3093_v21  ;;  %2901 = vset.pattern.permute.xlu0 %v4262_v16 }
 0x3b9   : > { %2081 = vperm.xlu1 %2871, %v3440_v5   ;;  %1984 = vperm.xlu0 %2901, %v3476_v26  }
 0x3bd   : > { %2872 = vset.pattern.permute.xlu1 %v3097_v33  ;;  %2904 = vset.pattern.permute.xlu0 %v4261_v25 }
 0x3be   : > { %1600 = vperm.xlu1 %2872, %v3440_v5   ;;  %1651 = vperm.xlu0 %2904, %v3476_v26  }
 0x3c2   : > { %2874 = vset.pattern.permute.xlu1 %v4261_v25  ;;  %2909 = vset.pattern.permute.xlu0 %v3093_v21 }
 0x3c3   : > { %1637 = vperm.xlu1 %2874, %v3440_v5   ;;  %2099 = vperm.xlu0 %2909, %v3497_v35   ;;  %v1820_v5 = vmul.f32 %v3545_v63, %v3552_v2 }
 0x3c5   : > { %v1850_v19 = vmul.f32 1.442695, %v1820_v5  ;;  %v1316_v5 = vcombine.high %v1306_v31, %v1306_v31  ;;  %v1812_v31 = vmul.f32 %v3611_v49, %v3552_v2 }
 0x3c7   : > { %2876 = vset.pattern.permute.xlu1 %v4260_v3  ;;  %2912 = vset.pattern.permute.xlu0 %v3096_v28  ;;  %2943 = vpow2.f32 %v1850_v19  ;;  %v3620_v19 = vrot.slane %v1724_v23, %v3525_v52  ;;  %v3632_v23 = vrot.slane %v1316_v5, %v3374_v47 }
 0x3c8   : > { %1863 = vperm.xlu1 %2876, %v3461_v15   ;;  %2062 = vperm.xlu0 %2912, %v3497_v35   ;;  %2945 = vpow2.f32 %v1846_v34  ;;  %v1382_v34 = vmul.f32 1.442695, %v1362_v0  ;;  %v1834_v0 = vmul.f32 1.442695, %v1812_v31 }
 0x3c9   : > { %2947 = vpow2.f32 %v1374_v46  ;;  %v3638_v46 = vrot.slane %v3601_v57, %v4269_v18  ;;  %v1762_v50 = vcombine.high %v3620_v19, %v3620_v19 }
 0x3ca   : > { %2949 = vpow2.f32 %v1842_v51  ;;  %v3644_v51 = vmul.f32 %v3540_v62, %v3395_v53  ;;  %v3656_v62 = vrot.slane %v3601_v57, %v4273_v40 }
 0x3cb   : > { %2951 = vpow2.f32 %v1838_v59  ;;  %v1283_v59 = vrot.slane %v1269_v32, %v3525_v52  ;;  %v3661_v32 = vrot.slane %v1762_v50, %v3374_v47 }
 0x3cc   : > { %2877 = vset.pattern.permute.xlu1 %v3084_v6  ;;  %2914 = vset.pattern.permute.xlu0 %v3094_v24  ;;  %2953 = vpow2.f32 %v1378_v60 }
 0x3cd   : > { %1900 = vperm.xlu1 %2877, %v3461_v15   ;;  %2025 = vperm.xlu0 %2914, %v3497_v35   ;;  %2955 = vpow2.f32 %v1382_v34  ;;  %v1285_v34 = vcombine.high %v1283_v59, %v1283_v59  ;;  %v1299_v31 = vrot.slane %v1283_v59, %v3525_v52  ;;  %v1810_v59 = vmul.f32 %v3661_v32, %v3552_v2 }
 0x3ce   : > { %2957 = vpow2.f32 %v1834_v0  ;;  %v3685_v0 = vrot.slane %v3644_v51, %v3365_v44 }
 0x3d1   : > { %2878 = vset.pattern.permute.xlu1 %v4268_v9  ;;  %2917 = vset.pattern.permute.xlu0 %v3097_v33 }
 0x3d2   : > { %1417 = vperm.xlu1 %2878, %v3461_v15   ;;  %1618 = vperm.xlu0 %2917, %v3497_v35  }
 0x3d4   : > { %v2944_v61 = vpop.eup %2943 }
 0x3d5   : > { %v1868_v27 = vmul.f32 0.0, %v2944_v61  ;;  %v2946_v38 = vpop.eup %2945 }
 0x3d6   : > { %2879 = vset.pattern.permute.xlu1 %v4274_v4  ;;  %2920 = vset.pattern.permute.xlu0 %v3084_v6  ;;  %v2948_v5 = vpop.eup %2947 }
 0x3d7   : > { %1937 = vperm.xlu1 %2879, %v3461_v15   ;;  %1914 = vperm.xlu0 %2920, %v3497_v35  }
 0x3db   : > { %2880 = vset.pattern.permute.xlu1 %v4265_v12  ;;  %2921 = vset.pattern.permute.xlu0 %v4260_v3 }
 0x3dc   : > { %1456 = vperm.xlu1 %2880, %v3461_v15   ;;  %1873 = vperm.xlu0 %2921, %v3476_v26  }
 0x3e0   : > { %2881 = vset.pattern.permute.xlu1 %v4262_v16  ;;  %2924 = vset.pattern.permute.xlu0 %v4264_v10 }
 0x3e1   : > { %1974 = vperm.xlu1 %2881, %v3461_v15  }
 0x3e5   : > { %2882 = vset.pattern.permute.xlu1 %v4263_v20 }
 0x3e6   : > { %1493 = vperm.xlu1 %2882, %v3461_v15  }
 0x3ea   : > { %2883 = vset.pattern.permute.xlu1 %v3094_v24 }
 0x3eb   : > { %2011 = vperm.xlu1 %2883, %v3461_v15  }
 0x3ef   : > { %2885 = vset.pattern.permute.xlu1 %v3096_v28 }
 0x3f0   : > { %2048 = vperm.xlu1 %2885, %v3461_v15  }
 0x3f4   : > { %2886 = vset.pattern.permute.xlu1 %v4270_v7 }
 0x3f5   : > { %1567 = vperm.xlu1 %2886, %v3461_v15  }
 0x3f9   : > { %2888 = vset.pattern.permute.xlu1 %v3097_v33 }
 0x3fa   : > { %1604 = vperm.xlu1 %2888, %v3461_v15  }
 0x3fe   : > { %2889 = vset.pattern.permute.xlu1 %v4264_v10 }
 0x3ff   : > { %2122 = vperm.xlu1 %2889, %v3461_v15  }
 0x403   : > { %2891 = vset.pattern.permute.xlu1 %v4271_v13 }
 0x404   : > { %1678 = vperm.xlu1 %2891, %v3461_v15  }
 0x407   : > { %v1860_v14 = vpop.permute.xlu1 %1859  ;;  %v1934_v61 = vpop.permute.xlu0 %1933 }
 0x408   : > { %v1866_v15 = vmul.f32 %v1860_v14, %v3616_v1  ;;  %2892 = vset.pattern.permute.xlu1 %v4268_v9  ;;  %v1364_v14 = vmul.f32 %v3632_v23, %v3552_v2 }
 0x409   : > { %1428 = vperm.xlu1 %2892, %v3476_v26  }
 0x40a   : > { %v3629_v36 = vadd.f32 %v1868_v27, %v1866_v15  ;;  %v2950_v27 = vpop.eup %2949 }
 0x40b   : > { %v2952_v25 = vpop.eup %2951 }
 0x40c   : > { %v1897_v55 = vpop.permute.xlu1 %1896  ;;  %v1905_v41 = vmul.f32 %v2946_v38, %v3629_v36  ;;  %v1940_v38 = vmul.f32 %v1934_v61, %v3656_v62  ;;  %v2954_v61 = vpop.eup %2953 }
 0x40d   : > { %v1903_v60 = vmul.f32 %v1897_v55, %v3638_v46  ;;  %2894 = vset.pattern.permute.xlu1 %v3093_v21  ;;  %v3665_v21 = vrot.slane %v3644_v51, %v3374_v47  ;;  %v2956_v20 = vpop.eup %2955 }
 0x40e   : > { %2095 = vperm.xlu1 %2894, %v3476_v26   ;;  %v2958_v12 = vpop.eup %2957 }
 0x40f   : > { %v3658_v15 = vadd.f32 %v1905_v41, %v1903_v60  ;;  %v1422_v41 = vmul.f32 0.0, %v2948_v5  ;;  %v1386_v60 = vmul.f32 1.442695, %v1364_v14  ;;  %v1560_v14 = vsub.s32 4, %v3362_v43 }
 0x411   : > { %v1942_v55 = vmul.f32 %v2950_v27, %v3658_v15  ;;  %v1413_v8 = vpop.permute.xlu1 %1412  ;;  %v1313_v27 = vrot.slane %v1285_v34, %v3525_v52  ;;  %2959 = vpow2.f32 %v1386_v60  ;;  %v1830_v52 = vmul.f32 1.442695, %v1810_v59 }
 0x412   : > { %v1420_v3 = vmul.f32 %v1413_v8, %v3665_v21  ;;  %2895 = vset.pattern.permute.xlu1 %v4264_v10  ;;  %v3681_v8 = vrot.slane %v1299_v31, %v3374_v47 }
 0x413   : > { %2132 = vperm.xlu1 %2895, %v3476_v26   ;;  %v3673_v50 = vadd.f32 %v1942_v55, %v1940_v38  ;;  %v3694_v34 = vrot.slane %v1313_v27, %v3374_v47  ;;  %2961 = vpow2.f32 %v1830_v52  ;;  %v3725_v52 = vrot.slane %v3644_v51, %v3368_v45 }
 0x414   : > { %v3677_v16 = vadd.f32 %v1422_v41, %v1420_v3  ;;  %v1366_v41 = vmul.f32 %v3681_v8, %v3552_v2 }
 0x415   : > { %v1979_v5 = vmul.f32 %v2952_v25, %v3673_v50 }
 0x416   : > { %v1453_v38 = vpop.permute.xlu1 %1452  ;;  %v1461_v55 = vmul.f32 %v2954_v61, %v3677_v16  ;;  %v3702_v61 = vrot.slane %v3588_v42, %v3374_v47 }
 0x417   : > { %v1459_v3 = vmul.f32 %v1453_v38, %v3685_v0  ;;  %2897 = vset.pattern.permute.xlu1 %v3096_v28  ;;  %v3707_v28 = vrot.slane %v3601_v57, %v1560_v14 }
 0x418   : > { %2058 = vperm.xlu1 %2897, %v3476_v26   ;;  %v1808_v42 = vmul.f32 %v3702_v61, %v3552_v2 }
 0x419   : > { %v3698_v25 = vadd.f32 %v1461_v55, %v1459_v3  ;;  %v1368_v55 = vmul.f32 %v3694_v34, %v3552_v2  ;;  %v1390_v3 = vmul.f32 1.442695, %v1366_v41 }
 0x41b   : > { %v1971_v60 = vpop.permute.xlu1 %1970  ;;  %v1498_v59 = vmul.f32 %v2956_v20, %v3698_v25  ;;  %v3721_v20 = vrot.slane %v3620_v19, %v3374_v47  ;;  %2963 = vpow2.f32 %v1390_v3 }
 0x41c   : > { %v1977_v38 = vmul.f32 %v1971_v60, %v3707_v28  ;;  %2898 = vset.pattern.permute.xlu1 %v4266_v17  ;;  %v1315_v60 = vcombine.high %v1299_v31, %v1299_v31 }
 0x41d   : > { %1540 = vperm.xlu1 %2898, %v3476_v26   ;;  %v1806_v19 = vmul.f32 %v3721_v20, %v3552_v2 }
 0x41e   : > { %v3717_v10 = vadd.f32 %v1979_v5, %v1977_v38  ;;  %v1394_v5 = vmul.f32 1.442695, %v1368_v55  ;;  %v1826_v38 = vmul.f32 1.442695, %v1808_v42  ;;  %v2960_v18 = vpop.eup %2959  ;;  %v3736_v31 = vrot.slane %v1315_v60, %v3374_v47 }
 0x420   : > { %v1490_v17 = vpop.permute.xlu1 %1489  ;;  %v2016_v41 = vmul.f32 %v2958_v12, %v3717_v10  ;;  %v3740_v12 = vrot.slane %v3601_v57, %v3377_v48  ;;  %2965 = vpow2.f32 %v1394_v5  ;;  %v2962_v60 = vpop.eup %2961 }
 0x421   : > { %v1496_v58 = vmul.f32 %v1490_v17, %v3725_v52  ;;  %2899 = vset.pattern.permute.xlu1 %v3094_v24  ;;  %v1317_v17 = vcombine.high %v1313_v27, %v1313_v27  ;;  %2967 = vpow2.f32 %v1826_v38 }
 0x422   : > { %2021 = vperm.xlu1 %2899, %v3476_v26  }
 0x423   : > { %v3733_v9 = vadd.f32 %v1498_v59, %v1496_v58  ;;  %v1822_v58 = vmul.f32 1.442695, %v1806_v19  ;;  %v1370_v59 = vmul.f32 %v3736_v31, %v3552_v2  ;;  %v3751_v27 = vrot.slane %v1317_v17, %v3374_v47  ;;  %v3761_v19 = vld [vmem:[%s4239_s11 + $0x8] sm:$0xff] }
 0x425   : > { %v2008_v3 = vpop.permute.xlu1 %2007  ;;  %v1535_v24 = vmul.f32 %v2960_v18, %v3733_v9  ;;  %v3755_v18 = vrot.slane %v3644_v51, %v3377_v48  ;;  %2969 = vpow2.f32 %v1822_v58  ;;  %v1398_v17 = vmul.f32 1.442695, %v1370_v59 }
 0x426   : > { %v2014_v55 = vmul.f32 %v2008_v3, %v3740_v12  ;;  %2900 = vset.pattern.permute.xlu1 %v4270_v7  ;;  %v1564_v3 = vpop.permute.xlu0 %1563  ;;  %v1821_v48 = vmul.f32 %v3545_v63, %v3761_v19  ;;  %v1372_v58 = vmul.f32 %v3751_v27, %v3552_v2 }
 0x427   : > { %1577 = vperm.xlu1 %2900, %v3476_v26   ;;  %2971 = vpow2.f32 %v1398_v17 }
 0x428   : > { %v3748_v42 = vadd.f32 %v2016_v41, %v2014_v55  ;;  %v3771_v55 = vrot.slane %v3644_v51, %v1560_v14  ;;  %v1852_v14 = vmul.f32 1.442695, %v1821_v48  ;;  %v1402_v2 = vmul.f32 1.442695, %v1372_v58 }
 0x42a   : > { %v1527_v5 = vpop.permute.xlu1 %1526  ;;  %v2053_v38 = vmul.f32 %v2962_v60, %v3748_v42  ;;  %v1570_v59 = vmul.f32 %v1564_v3, %v3771_v55  ;;  %2973 = vpow2.f32 %v1852_v14  ;;  %v2119_v58 = vpop.permute.xlu0 %2118 }
 0x42b   : > { %v1533_v41 = vmul.f32 %v1527_v5, %v3755_v18  ;;  %2902 = vset.pattern.permute.xlu1 %v3097_v33  ;;  %v2964_v5 = vpop.eup %2963  ;;  %v3779_v33 = vrot.slane %v3601_v57, %v3368_v45  ;;  %v1819_v45 = vmul.f32 %v3559_v11, %v3761_v19  ;;  %2975 = vpow2.f32 %v1402_v2 }
 0x42c   : > { %1614 = vperm.xlu1 %2902, %v3476_v26   ;;  %v1359_v11 = vmul.f32 %v3569_v29, %v3761_v19 }
 0x42d   : > { %v3773_v60 = vadd.f32 %v1535_v24, %v1533_v41  ;;  %v2966_v41 = vpop.eup %2965 }
 0x42e   : > { %v2968_v3 = vpop.eup %2967 }
 0x42f   : > { %v1572_v7 = vmul.f32 %v2964_v5, %v3773_v60  ;;  %v2045_v63 = vpop.permute.xlu1 %2044  ;;  %v3794_v5 = vrot.slane %v3601_v57, %v3365_v44  ;;  %v1817_v44 = vmul.f32 %v3572_v30, %v3761_v19  ;;  %v4299_v30 = vmov 7  }
 0x430   : > { %v2051_v13 = vmul.f32 %v2045_v63, %v3779_v33  ;;  %2903 = vset.pattern.permute.xlu1 %v4274_v4  ;;  %v4303_v4 = vmov 1  }
 0x431   : > { %1947 = vperm.xlu1 %2903, %v3476_v26   ;;  %v3786_v24 = vadd.f32 %v1572_v7, %v1570_v59 }
 0x432   : > { %v3790_v40 = vadd.f32 %v2053_v38, %v2051_v13  ;;  %v1848_v13 = vmul.f32 1.442695, %v1819_v45  ;;  %v3807_v38 = vrot.slane %v3601_v57, %v3374_v47  ;;  %v2970_v14 = vpop.eup %2969  ;;  %v1376_v47 = vmul.f32 1.442695, %v1359_v11 }
 0x433   : > { %v1609_v63 = vmul.f32 %v2966_v41, %v3786_v24  ;;  %v1844_v57 = vmul.f32 1.442695, %v1817_v44  ;;  %v4301_v11 = vmov 0  }
 0x434   : > { %v2082_v17 = vpop.permute.xlu1 %2081  ;;  %v2090_v48 = vmul.f32 %v2968_v3, %v3790_v40  ;;  %v2125_v41 = vmul.f32 %v2119_v58, %v3807_v38  ;;  %2977 = vpow2.f32 %v1848_v13  ;;  %v2972_v58 = vpop.eup %2971 }
 0x435   : > { %v2088_v7 = vmul.f32 %v2082_v17, %v3794_v5  ;;  %2905 = vset.pattern.permute.xlu1 %v3084_v6  ;;  %v4298_v6 = vsub.s32 5, %v3362_v43  ;;  %2979 = vpow2.f32 %v1376_v47 }
 0x436   : > { %1910 = vperm.xlu1 %2905, %v3476_v26   ;;  %2981 = vpow2.f32 %v1844_v57 }
 0x437   : > { %v3809_v59 = vadd.f32 %v2090_v48, %v2088_v7  ;;  %v3814_v2 = vrot.slane %v3644_v51, %v4298_v6  ;;  %v1361_v48 = vmul.f32 %v3585_v39, %v3761_v19  ;;  %v4300_v6 = vsub.s32 6, %v3362_v43  ;;  %v2974_v39 = vpop.eup %2973 }
 0x438   : > { %v2976_v47 = vpop.eup %2975 }
 0x439   : > { %v1601_v45 = vpop.permute.xlu1 %1600  ;;  %v2127_v29 = vmul.f32 %v2970_v14, %v3809_v59  ;;  %v3830_v14 = vrot.slane %v3644_v51, %v4300_v6  ;;  %v1380_v44 = vmul.f32 1.442695, %v1361_v48 }
 0x43a   : > { %v1607_v3 = vmul.f32 %v1601_v45, %v3814_v2  ;;  %2906 = vset.pattern.permute.xlu1 %v4299_v30 }
 0x43b   : > { %1688 = vperm.xlu1 %2906, %v3476_v26   ;;  %v3821_v17 = vadd.f32 %v2127_v29, %v2125_v41  ;;  %v1675_v41 = vpop.permute.xlu0 %1674  ;;  %v4302_v29 = vsub.s32 7, %v3362_v43  ;;  %2983 = vpow2.f32 %v1380_v44  ;;  %v4304_v44 = vmov 8  }
 0x43c   : > { %v3825_v7 = vadd.f32 %v1609_v63, %v1607_v3  ;;  %v1815_v63 = vmul.f32 %v3580_v37, %v3761_v19 }
 0x43d   : > { %v3841_v3 = vrot.slane %v3644_v51, %v4302_v29  ;;  %v1363_v51 = vmul.f32 %v3597_v56, %v3761_v19 }
 0x43e   : > { %v1638_v45 = vpop.permute.xlu1 %1637  ;;  %v1646_v13 = vmul.f32 %v2972_v58, %v3825_v7  ;;  %v1840_v37 = vmul.f32 1.442695, %v1815_v63  ;;  %v1813_v63 = vmul.f32 %v3611_v49, %v3761_v19 }
 0x43f   : > { %v1644_v26 = vmul.f32 %v1638_v45, %v3830_v14  ;;  %2907 = vset.pattern.permute.xlu1 %v4301_v11  ;;  %v1681_v6 = vmul.f32 %v1675_v41, %v3841_v3  ;;  %v1869_v11 = vmul.f32 0.0, %v2974_v39 }
 0x440   : > { %1433 = vperm.xlu1 %2907, %v3497_v35   ;;  %2985 = vpow2.f32 %v1840_v37  ;;  %v1365_v37 = vmul.f32 %v3632_v23, %v3761_v19  ;;  %v1811_v23 = vmul.f32 %v3661_v32, %v3761_v19 }
 0x441   : > { %v3843_v58 = vadd.f32 %v1646_v13, %v1644_v26  ;;  %v2978_v26 = vpop.eup %2977 }
 0x442   : > { %v2980_v39 = vpop.eup %2979 }
 0x443   : > { %v1864_v45 = vpop.permute.xlu1 %1863  ;;  %v1683_v57 = vmul.f32 %v2976_v47, %v3843_v58  ;;  %v2982_v56 = vpop.eup %2981 }
 0x444   : > { %v1867_v48 = vmul.f32 %v1864_v45, %v3616_v1  ;;  %2908 = vset.pattern.permute.xlu1 %v4303_v4  ;;  %v1384_v4 = vmul.f32 1.442695, %v1363_v51 }
 0x445   : > { %1470 = vperm.xlu1 %2908, %v3497_v35   ;;  %v3850_v43 = vadd.f32 %v1683_v57, %v1681_v6 }
 0x446   : > { %v3854_v13 = vadd.f32 %v1869_v11, %v1867_v48  ;;  %2987 = vpow2.f32 %v1384_v4  ;;  %v1423_v48 = vmul.f32 0.0, %v2980_v39  ;;  %v1836_v11 = vmul.f32 1.442695, %v1813_v63 }
 0x448   : > { %v1901_v41 = vpop.permute.xlu1 %1900  ;;  %v1906_v29 = vmul.f32 %v2978_v26, %v3854_v13  ;;  %v2984_v49 = vpop.eup %2983  ;;  %2989 = vpow2.f32 %v1836_v11 }
 0x449   : > { %v1904_v1 = vmul.f32 %v1901_v41, %v3638_v46  ;;  %2910 = vset.pattern.permute.xlu1 %v4304_v44  ;;  %v4305_v46 = vmov 2   ;;  %v1388_v44 = vmul.f32 1.442695, %v1365_v37 }
 0x44a   : > { %2136 = vperm.xlu1 %2910, %v3497_v35  }
 0x44b   : > { %v3862_v47 = vadd.f32 %v1906_v29, %v1904_v1  ;;  %v4306_v1 = vmov 3   ;;  %2991 = vpow2.f32 %v1388_v44 }
 0x44d   : > { %v1418_v6 = vpop.permute.xlu1 %1417  ;;  %v1943_v45 = vmul.f32 %v2982_v56, %v3862_v47  ;;  %v2986_v39 = vpop.eup %2985 }
 0x44e   : > { %v1421_v57 = vmul.f32 %v1418_v6, %v3665_v21  ;;  %2911 = vset.pattern.permute.xlu1 %v4305_v46  ;;  %v1367_v21 = vmul.f32 %v3681_v8, %v3761_v19  ;;  %v1809_v8 = vmul.f32 %v3702_v61, %v3761_v19  ;;  %v1369_v61 = vmul.f32 %v3694_v34, %v3761_v19 }
 0x44f   : > { %1507 = vperm.xlu1 %2911, %v3497_v35  }
 0x450   : > { %v3870_v51 = vadd.f32 %v1423_v48, %v1421_v57  ;;  %v1392_v6 = vmul.f32 1.442695, %v1367_v21  ;;  %v4307_v57 = vmov 4   ;;  %v1832_v48 = vmul.f32 1.442695, %v1811_v23 }
 0x452   : > { %v1938_v26 = vpop.permute.xlu1 %1937  ;;  %v1462_v41 = vmul.f32 %v2984_v49, %v3870_v51  ;;  %2993 = vpow2.f32 %v1392_v6  ;;  %v1807_v49 = vmul.f32 %v3721_v20, %v3761_v19  ;;  %v1396_v20 = vmul.f32 1.442695, %v1369_v61 }
 0x453   : > { %v1941_v29 = vmul.f32 %v1938_v26, %v3656_v62  ;;  %2913 = vset.pattern.permute.xlu1 %v4306_v1  ;;  %v2988_v32 = vpop.eup %2987  ;;  %2995 = vpow2.f32 %v1832_v48  ;;  %v1828_v26 = vmul.f32 1.442695, %v1809_v8  ;;  %v4310_v8 = vmov 6  }
 0x454   : > { %1544 = vperm.xlu1 %2913, %v3497_v35   ;;  %v1824_v23 = vmul.f32 1.442695, %v1807_v49 }
 0x455   : > { %v3880_v4 = vadd.f32 %v1943_v45, %v1941_v29  ;;  %v2990_v1 = vpop.eup %2989  ;;  %2997 = vpow2.f32 %v1828_v26 }
 0x456   : > { %2999 = vpow2.f32 %v1824_v23 }
 0x457   : > { %v1457_v63 = vpop.permute.xlu1 %1456  ;;  %v1980_v56 = vmul.f32 %v2986_v39, %v3880_v4  ;;  %v4309_v39 = vmov 13   ;;  %3001 = vpow2.f32 %v1396_v20 }
 0x458   : > { %v1460_v62 = vmul.f32 %v1457_v63, %v3685_v0  ;;  %2915 = vset.pattern.permute.xlu1 %v4307_v57  ;;  %v4308_v0 = vmov 12   ;;  %v1371_v63 = vmul.f32 %v3736_v31, %v3761_v19 }
 0x459   : > { %1581 = vperm.xlu1 %2915, %v3497_v35  }
 0x45a   : > { %v3888_v46 = vadd.f32 %v1462_v41, %v1460_v62  ;;  %v1531_v41 = vpop.permute.xlu0 %1530  ;;  %v1400_v31 = vmul.f32 1.442695, %v1371_v63 }
 0x45b   : > { %v1534_v62 = vmul.f32 %v1531_v41, %v3755_v18 }
 0x45c   : > { %v1975_v45 = vpop.permute.xlu1 %1974  ;;  %v1499_v11 = vmul.f32 %v2988_v32, %v3888_v46  ;;  %3003 = vpow2.f32 %v1400_v31 }
 0x45d   : > { %v1978_v37 = vmul.f32 %v1975_v45, %v3707_v28  ;;  %2916 = vset.pattern.permute.xlu1 %v4308_v0  ;;  %v1373_v45 = vmul.f32 %v3751_v27, %v3761_v19 }
 0x45e   : > { %1988 = vperm.xlu1 %2916, %v3497_v35   ;;  %v2086_v6 = vpop.permute.xlu0 %2085 }
 0x45f   : > { %v3898_v29 = vadd.f32 %v1980_v56, %v1978_v37  ;;  %v2992_v56 = vpop.eup %2991  ;;  %v1404_v41 = vmul.f32 1.442695, %v1373_v45  ;;  %v2089_v19 = vmul.f32 %v2086_v6, %v3794_v5 }
 0x461   : > { %v1494_v21 = vpop.permute.xlu1 %1493  ;;  %v2017_v44 = vmul.f32 %v2990_v1, %v3898_v29  ;;  %3005 = vpow2.f32 %v1404_v41  ;;  %v4312_v41 = vmov 0.0  }
 0x462   : > { %v1497_v28 = vmul.f32 %v1494_v21, %v3725_v52  ;;  %2918 = vset.pattern.permute.xlu1 %v4309_v39  ;;  %v1642_v49 = vpop.permute.xlu0 %1641 }
 0x463   : > { %1951 = vperm.xlu1 %2918, %v3497_v35  }
 0x464   : > { %v3906_v34 = vadd.f32 %v1499_v11, %v1497_v28  ;;  %v2994_v11 = vpop.eup %2993 }
 0x465   : > { %v2996_v18 = vpop.eup %2995 }
 0x466   : > { %v1536_v57 = vmul.f32 %v2992_v56, %v3906_v34  ;;  %v2012_v48 = vpop.permute.xlu1 %2011  ;;  %v2998_v27 = vpop.eup %2997 }
 0x467   : > { %v2015_v52 = vmul.f32 %v2012_v48, %v3740_v12  ;;  %2919 = vset.pattern.permute.xlu1 %v4310_v8  ;;  %v3928_v23 = vpop.permute.xlu0 %1466  ;;  %v3000_v39 = vpop.eup %2999 }
 0x468   : > { %1655 = vperm.xlu1 %2919, %v3497_v35   ;;  %v3913_v32 = vadd.f32 %v1536_v57, %v1534_v62  ;;  %v3002_v63 = vpop.eup %3001 }
 0x469   : > { %v3917_v37 = vadd.f32 %v2017_v44, %v2015_v52  ;;  %v1645_v52 = vmul.f32 %v1642_v49, %v3830_v14  ;;  %v2176_v14 = vld [vmem:[%s4241_s13 + $0x38] sm:$0xff] }
 0x46a   : > { %v1573_v0 = vmul.f32 %v2994_v11, %v3913_v32  ;;  %2738 = vmatpush3.msra.mxu1 %v2176_v14 }
 0x46b   : > { %v2049_v26 = vpop.permute.xlu1 %2048  ;;  %v2054_v12 = vmul.f32 %v2996_v18, %v3917_v37  ;;  %v3937_v57 = vpop.permute.xlu0 %1503  ;;  %2739 = vmatprep.subr.mxu1 %v4312_v41 }
 0x46c   : > { %v2052_v61 = vmul.f32 %v2049_v26, %v3779_v33  ;;  %2922 = vset.pattern.permute.xlu1 %v4299_v30  ;;  %v4311_v33 = vmov 15  }
 0x46d   : > { %1692 = vperm.xlu1 %2922, %v3497_v35  }
 0x46e   : > { %v3924_v1 = vadd.f32 %v2054_v12, %v2052_v61 }
 0x46f   : > { %v3946_v18 = vpop.permute.xlu0 %1984 }
 0x470   : > { %v2091_v21 = vmul.f32 %v2998_v27, %v3924_v1  ;;  %v1568_v44 = vpop.permute.xlu1 %1567  ;;  %v2174_v27 = vld [vmem:[%s4241_s13 + $0x28] sm:$0xff] }
 0x471   : > { %v1571_v28 = vmul.f32 %v1568_v44, %v3771_v55  ;;  %2923 = vset.pattern.permute.xlu1 %v4311_v33  ;;  %v3004_v55 = vpop.eup %3003  ;;  %v2172_v44 = vld [vmem:[%s4241_s13 + $0x18] sm:$0xff] }
 0x472   : > { %v2093_v30 = vadd.f32 %v2091_v21, %v2089_v19  ;;  %1877 = vperm.xlu1 %2923, %v3497_v35   ;;  %v3006_v11 = vpop.eup %3005  ;;  %v2173_v19 = vld [vmem:[%s4241_s13 + $0x20] sm:$0xff] }
 0x473   : > { %v3933_v20 = vadd.f32 %v1573_v0, %v1571_v28  ;;  %v3958_v49 = vpop.permute.xlu0 %1651 }
 0x474   : > { %v2128_v56 = vmul.f32 %v3000_v39, %v2093_v30  ;;  %v2171_v39 = vld [vmem:[%s4241_s13 + $0x10] sm:$0xff] }
 0x475   : > { %v1605_v62 = vpop.permute.xlu1 %1604  ;;  %v1610_v5 = vmul.f32 %v3002_v63, %v3933_v20 }
 0x476   : > { %v1608_v6 = vmul.f32 %v1605_v62, %v3814_v2 }
 0x477   : > { %v2100_v28 = vpop.permute.xlu0 %2099 }
 0x478   : > { %v3939_v48 = vadd.f32 %v1610_v5, %v1608_v6  ;;  %v2103_v33 = vmul.f32 %v2100_v28, %v2093_v30  ;;  %v2169_v5 = vld [vmem:[%s4241_s13] sm:$0xff] }
 0x47a   : > { %v2123_v8 = vpop.permute.xlu1 %2122  ;;  %v1647_v35 = vmul.f32 %v3004_v55, %v3939_v48  ;;  %v2105_v30 = vsel %vm936_vm6, %v2103_v33, 0.0 }
 0x47b   : > { %v2126_v31 = vmul.f32 %v2123_v8, %v3807_v38  ;;  %v2175_v38 = vld [vmem:[%s4241_s13 + $0x30] sm:$0xff] }
 0x47c   : > { %v3944_v45 = vadd.f32 %v1647_v35, %v1645_v52  ;;  %2740 = vmatpush3.msra.mxu1 %v2175_v38  ;;  %v2063_v52 = vpop.permute.xlu0 %2062 }
 0x47d   : > { %v3948_v0 = vadd.f32 %v2128_v56, %v2126_v31  ;;  %2741 = vmatprep.subr.mxu1 %v4312_v41  ;;  %v2170_v56 = vld [vmem:[%s4241_s13 + $0x8] sm:$0xff]  ;;  %v2066_v8 = vmul.f32 %v2063_v52, %v3924_v1 }
 0x47e   : > { %v1684_v2 = vmul.f32 %v3006_v11, %v3944_v45  ;;  %2742 = vmatpush3.msra.mxu1 %v2174_v27 }
 0x47f   : > { %v1679_v26 = vpop.permute.xlu1 %1678  ;;  %2743 = vmatprep.subr.mxu1 %v4312_v41 }
 0x480   : > { %v1682_v12 = vmul.f32 %v1679_v26, %v3841_v3  ;;  %2744 = vmatpush3.msra.mxu1 %v2173_v19  ;;  %v2026_v38 = vpop.permute.xlu0 %2025 }
 0x481   : > { %2745 = vmatprep.subr.mxu1 %v4312_v41 }
 0x482   : > { %v3960_v61 = vadd.f32 %v1684_v2, %v1682_v12  ;;  %2746 = vmatpush3.msra.mxu1 %v2172_v44  ;;  %v2068_v2 = vsel %vm936_vm6, %v2066_v8, 0.0 }
 0x483   : > { %2747 = vmatprep.subr.mxu1 %v4312_v41 }
 0x484   : > { %v1429_v3 = vpop.permute.xlu1 %1428  ;;  %2748 = vmatpush3.msra.mxu1 %v2171_v39  ;;  %v1619_v28 = vpop.permute.xlu0 %1618 }
 0x485   : > { %v1436_v21 = vmul.f32 %v1429_v3, %v3677_v16  ;;  %2749 = vmatprep.subr.mxu1 %v4312_v41  ;;  %v1622_v33 = vmul.f32 %v1619_v28, %v3939_v48 }
 0x486   : > { %2750 = vmatpush3.msra.mxu1 %v2170_v56 }
 0x487   : > { %2751 = vmatprep.subr.mxu1 %v4312_v41 }
 0x488   : > { %2752 = vmatpush3.msra.mxu1 %v2169_v5  ;;  %v1915_v56 = vpop.permute.xlu0 %1914 }
 0x489   : > { %v2096_v63 = vpop.permute.xlu1 %2095  ;;  %2767 = vmatprep.subr.mxu1 %v4312_v41 }
 0x48a   : > { %v2102_v16 = vmul.f32 %v2096_v63, %v3809_v59 }
 0x48c   : > { %v2104_v62 = vsel %vm936_vm6, %v2102_v16, 0.0 }
 0x48d   : > { %v2106_v6 = vadd.f32 %v2105_v30, %v2104_v62  ;;  %v1918_v62 = vmul.f32 %v1915_v56, %v3862_v47 }
 0x48e   : > { %v2133_v59 = vpop.permute.xlu1 %2132 }
 0x48f   : > { %v2139_v55 = vmul.f32 %v2133_v59, %v3821_v17  ;;  %v2029_v17 = vmul.f32 %v2026_v38, %v3917_v37  ;;  %v1624_v37 = vsel %vm936_vm6, %v1622_v33, 0.0  ;;  %v1920_v59 = vsel %vm936_vm6, %v1918_v62, 0.0 }
 0x491   : > { %v2031_v19 = vsel %vm936_vm6, %v2029_v17, 0.0  ;;  %v2141_v56 = vsel %vm936_vm6, %v2139_v55, 0.0 }
 0x493   : > { %v2059_v35 = vpop.permute.xlu1 %2058 }
 0x494   : > { %v2065_v31 = vmul.f32 %v2059_v35, %v3790_v40 }
 0x496   : > { %v2067_v11 = vsel %vm936_vm6, %v2065_v31, 0.0  ;;  %v1473_v31 = vmul.f32 %v3928_v23, %v3698_v25 }
 0x497   : > { %v2069_v26 = vadd.f32 %v2068_v2, %v2067_v11  ;;  %v1438_v11 = vsel %vm936_vm6, %v1436_v21, 0.0  ;;  %v2107_v2 = vrot.slane %v2106_v6, 4 }
 0x498   : > { %v1541_v12 = vpop.permute.xlu1 %1540 }
 0x499   : > { %v3998_v14 = vmul.f32 %v1541_v12, %v3773_v60  ;;  %v2070_v38 = vrot.slane %v2069_v26, 4 }
 0x49b   : > { %v2071_v25 = vadd.f32 %v2070_v38, %v2069_v26 }
 0x49d   : > { %v2022_v27 = vpop.permute.xlu1 %2021 }
 0x49e   : > { %v2028_v3 = vmul.f32 %v2022_v27, %v3748_v42 }
 0x4a0   : > { %v2030_v1 = vsel %vm936_vm6, %v2028_v3, 0.0  ;;  %v1475_v3 = vsel %vm936_vm6, %v1473_v31, 0.0 }
 0x4a1   : > { %v2032_v40 = vadd.f32 %v2031_v19, %v2030_v1  ;;  %v2108_v1 = vadd.f32 %v2107_v2, %v2106_v6  ;;  %v1510_v6 = vmul.f32 %v3937_v57, %v3733_v9 }
 0x4a2   : > { %v4004_v44 = vpop.permute.xlu1 %1577 }
 0x4a3   : > { %v2033_v19 = vrot.slane %v2032_v40, 4  ;;  %v1512_v55 = vsel %vm936_vm6, %v1510_v6, 0.0 }
 0x4a7   : > { %v1615_v39 = vpop.permute.xlu1 %1614 }
 0x4a8   : > { %v1621_v60 = vmul.f32 %v1615_v39, %v3825_v7 }
 0x4aa   : > { %v1623_v63 = vsel %vm936_vm6, %v1621_v60, 0.0 }
 0x4ab   : > { %v4010_v16 = vadd.f32 %v1624_v37, %v1623_v63  ;;  %v2109_v63 = vrot.slane %v2108_v1, 2  ;;  %v2034_v37 = vadd.f32 %v2033_v19, %v2032_v40 }
 0x4ac   : > { %v4012_v42 = vpop.permute.xlu1 %1947 }
 0x4b1   : > { %v1911_v30 = vpop.permute.xlu1 %1910 }
 0x4b2   : > { %v1917_v5 = vmul.f32 %v1911_v30, %v3658_v15 }
 0x4b4   : > { %v1919_v48 = vsel %vm936_vm6, %v1917_v5, 0.0  ;;  %v2072_v5 = vrot.slane %v2071_v25, 2 }
 0x4b5   : > { %v4018_v52 = vadd.f32 %v1920_v59, %v1919_v48 }
 0x4b6   : > { %v4020_v7 = vpop.permute.xlu1 %1688 }
 0x4bb   : > { %v1434_v8 = vpop.permute.xlu1 %1433 }
 0x4bc   : > { %v1437_v35 = vmul.f32 %v1434_v8, %v3870_v51  ;;  %v2110_v8 = vadd.f32 %v2109_v63, %v2108_v1 }
 0x4be   : > { %v1439_v47 = vsel %vm936_vm6, %v1437_v35, 0.0  ;;  %v2035_v35 = vrot.slane %v2034_v37, 2  ;;  %v2111_v9 = vrot.slane %v2110_v8, 1 }
 0x4bf   : > { %v1440_v15 = vadd.f32 %v1439_v47, %v1438_v11  ;;  %v2073_v47 = vadd.f32 %v2072_v5, %v2071_v25 }
 0x4c0   : > { %v1471_v12 = vpop.permute.xlu1 %1470  ;;  %v2036_v57 = vadd.f32 %v2035_v35, %v2034_v37 }
 0x4c1   : > { %v1441_v17 = vrot.slane %v1440_v15, 4  ;;  %v1474_v27 = vmul.f32 %v1471_v12, %v3888_v46 }
 0x4c2   : > { %v2037_v63 = vrot.slane %v2036_v57, 1 }
 0x4c3   : > { %v1442_v28 = vadd.f32 %v1441_v17, %v1440_v15  ;;  %v1476_v51 = vsel %vm936_vm6, %v1474_v27, 0.0 }
 0x4c4   : > { %v1477_v33 = vadd.f32 %v1476_v51, %v1475_v3  ;;  %v1549_v51 = vsel %vm936_vm6, %v3998_v14, 0.0  ;;  %v2038_v35 = vadd.f32 %v2037_v63, %v2036_v57 }
 0x4c5   : > { %v1443_v23 = vrot.slane %v1442_v28, 2  ;;  %v2137_v21 = vpop.permute.xlu1 %2136 }
 0x4c6   : > { %v1478_v39 = vrot.slane %v1477_v33, 4  ;;  %v2140_v60 = vmul.f32 %v2137_v21, %v3948_v0 }
 0x4c7   : > { %v1444_v62 = vadd.f32 %v1443_v23, %v1442_v28  ;;  %v2074_v28 = vrot.slane %v2073_v47, 1  ;;  %v1584_v23 = vmul.f32 %v4004_v44, %v3786_v24  ;;  %v1991_v44 = vmul.f32 %v3946_v18, %v3717_v10 }
 0x4c8   : > { %v1479_v46 = vadd.f32 %v1478_v39, %v1477_v33  ;;  %v2142_v30 = vsel %vm936_vm6, %v2140_v60, 0.0  ;;  %v1626_v33 = vrot.slane %v4010_v16, 4 }
 0x4c9   : > { %v2143_v59 = vadd.f32 %v2142_v30, %v2141_v56  ;;  %v1445_v11 = vrot.slane %v1444_v62, 1 }
 0x4ca   : > { %v1480_v48 = vrot.slane %v1479_v46, 2  ;;  %v1508_v26 = vpop.permute.xlu1 %1507  ;;  %v1627_v30 = vadd.f32 %v1626_v33, %v4010_v16 }
 0x4cb   : > { %v2144_v31 = vrot.slane %v2143_v59, 4  ;;  %v1511_v0 = vmul.f32 %v1508_v26, %v3906_v34  ;;  %v1446_v3 = vadd.f32 %v1445_v11, %v1444_v62  ;;  %v2112_v62 = vadd.f32 %v2111_v9, %v2110_v8 }
 0x4cc   : > { %v1481_v40 = vadd.f32 %v1480_v48, %v1479_v46  ;;  %v1586_v48 = vsel %vm936_vm6, %v1584_v23, 0.0  ;;  %v1922_v9 = vrot.slane %v4018_v52, 4 }
 0x4cd   : > { %v2145_v2 = vadd.f32 %v2144_v31, %v2143_v59  ;;  %v1513_v15 = vsel %vm936_vm6, %v1511_v0, 0.0  ;;  %v2075_v59 = vadd.f32 %v2074_v28, %v2073_v47 }
 0x4ce   : > { %v1482_v12 = vrot.slane %v1481_v40, 1  ;;  %v1514_v38 = vadd.f32 %v1513_v15, %v1512_v55  ;;  %v1628_v55 = vrot.slane %v1627_v30, 2 }
 0x4cf   : > { %v2146_v17 = vrot.slane %v2145_v2, 2  ;;  %v1545_v27 = vpop.permute.xlu1 %1544 }
 0x4d0   : > { %v1483_v1 = vadd.f32 %v1482_v12, %v1481_v40  ;;  %v1515_v19 = vrot.slane %v1514_v38, 4  ;;  %v1548_v34 = vmul.f32 %v1545_v27, %v3913_v32  ;;  %v808_v32 = vsub.f32 0.0, %v3388_v22 }
 0x4d1   : > { %v2147_v25 = vadd.f32 %v2146_v17, %v2145_v2  ;;  %v1954_v17 = vmul.f32 %v4012_v42, %v3673_v50  ;;  %v1658_v50 = vmul.f32 %v3958_v49, %v3843_v58 }
 0x4d2   : > { %v1707_v21 = vsel %vm1706_vm7, %v1446_v3, %v1483_v1  ;;  %v1516_v39 = vadd.f32 %v1515_v19, %v1514_v38  ;;  %v1550_v60 = vsel %vm936_vm6, %v1548_v34, 0.0  ;;  %v809_v10 = vmul.f32 1.442695, %v808_v32 }
 0x4d3   : > { %v2148_v37 = vrot.slane %v2147_v25, 1  ;;  %v1551_v56 = vadd.f32 %v1550_v60, %v1549_v51  ;;  %v1993_v38 = vsel %vm936_vm6, %v1991_v44, 0.0  ;;  %v1629_v19 = vadd.f32 %v1628_v55, %v1627_v30 }
 0x4d4   : > { %v1517_v46 = vrot.slane %v1516_v39, 2  ;;  %v1582_v14 = vpop.permute.xlu1 %1581  ;;  %3007 = vpow2.f32 %v809_v10  ;;  %v1956_v42 = vsel %vm936_vm6, %v1954_v17, 0.0  ;;  %v1660_v58 = vsel %vm936_vm6, %v1658_v50, 0.0 }
 0x4d5   : > { %v2149_v6 = vadd.f32 %v2148_v37, %v2147_v25  ;;  %v1552_v5 = vrot.slane %v1551_v56, 4  ;;  %v1585_v24 = vmul.f32 %v1582_v14, %v3933_v20  ;;  %v1630_v60 = vrot.slane %v1629_v19, 1 }
 0x4d6   : > { %v1518_v26 = vadd.f32 %v1517_v46, %v1516_v39 }
 0x4d7   : > { %v2150_v31 = vsel %vm1706_vm7, %v2149_v6, %v2112_v62  ;;  %v1553_v8 = vadd.f32 %v1552_v5, %v1551_v56  ;;  %v1587_v0 = vsel %vm936_vm6, %v1585_v24, 0.0  ;;  %v1631_v49 = vadd.f32 %v1630_v60, %v1629_v19 }
 0x4d8   : > { %v2151_v11 = vsel %vm1708_vm8, %v2150_v31, %v2075_v59  ;;  %v1519_v16 = vrot.slane %v1518_v26, 1  ;;  %v1588_v40 = vadd.f32 %v1587_v0, %v1586_v48  ;;  %v1695_v24 = vmul.f32 %v4020_v7, %v3850_v43 }
 0x4d9   : > { %v1554_v2 = vrot.slane %v1553_v8, 2  ;;  %v1989_v20 = vpop.permute.xlu1 %1988  ;;  %v2152_v15 = vsel %vm822_vm2, %v2151_v11, %v2038_v35 }
 0x4da   : > { %v1520_v18 = vadd.f32 %v1519_v16, %v1518_v26  ;;  %v1589_v47 = vrot.slane %v1588_v40, 4  ;;  %v1992_v12 = vmul.f32 %v1989_v20, %v3898_v29  ;;  %v1923_v29 = vadd.f32 %v1922_v9, %v4018_v52 }
 0x4db   : > { %v1555_v57 = vadd.f32 %v1554_v2, %v1553_v8  ;;  %v1697_v2 = vsel %vm936_vm6, %v1695_v24, 0.0 }
 0x4dc   : > { %v1709_v27 = vsel %vm1708_vm8, %v1707_v21, %v1520_v18  ;;  %v1590_v3 = vadd.f32 %v1589_v47, %v1588_v40  ;;  %v1994_v1 = vsel %vm936_vm6, %v1992_v12, 0.0  ;;  %v1924_v46 = vrot.slane %v1923_v29, 2 }
 0x4dd   : > { %v1556_v34 = vrot.slane %v1555_v57, 1  ;;  %v1995_v28 = vadd.f32 %v1994_v1, %v1993_v38 }
 0x4de   : > { %v1591_v51 = vrot.slane %v1590_v3, 2  ;;  %v1952_v33 = vpop.permute.xlu1 %1951  ;;  %v1925_v26 = vadd.f32 %v1924_v46, %v1923_v29  ;;  %v2157_v46 = vadd.f32 %v3397_v54, %v3395_v53 }
 0x4df   : > { %v1557_v25 = vadd.f32 %v1556_v34, %v1555_v57  ;;  %v1996_v23 = vrot.slane %v1995_v28, 4  ;;  %v1955_v39 = vmul.f32 %v1952_v33, %v3880_v4 }
 0x4e0   : > { %v1592_v21 = vadd.f32 %v1591_v51, %v1590_v3  ;;  %v1926_v20 = vrot.slane %v1925_v26, 1 }
 0x4e1   : > { %v1710_v63 = vsel %vm822_vm2, %v1709_v27, %v1557_v25  ;;  %v1997_v37 = vadd.f32 %v1996_v23, %v1995_v28  ;;  %v1957_v56 = vsel %vm936_vm6, %v1955_v39, 0.0  ;;  %v3008_v7 = vpop.eup %3007 }
 0x4e2   : > { %v1593_v32 = vrot.slane %v1592_v21, 1  ;;  %v1958_v62 = vadd.f32 %v1957_v56, %v1956_v42  ;;  %v811_v27 = vadd.f32 1.0, %v3008_v7  ;;  %v1927_v19 = vadd.f32 %v1926_v20, %v1925_v26  ;;  %v2579_v7 = vld [vmem:[%s4243_s15] ss:$0 sm:$0xff] }
 0x4e3   : > { %v1998_v52 = vrot.slane %v1997_v37, 2  ;;  %v1656_v14 = vpop.permute.xlu1 %1655 }
 0x4e4   : > { %v1594_v30 = vadd.f32 %v1593_v32, %v1592_v21  ;;  %v1959_v4 = vrot.slane %v1958_v62, 4  ;;  %v1659_v6 = vmul.f32 %v1656_v14, %v3944_v45  ;;  %v1874_v45 = vpop.permute.xlu0 %1873  ;;  %3009 = vrcp.f32 %v811_v27  ;;  %v2576_v14 = vld [vmem:[%s4240_s12] ss:$0 sm:$0xff] }
 0x4e5   : > { %v1999_v5 = vadd.f32 %v1998_v52, %v1997_v37  ;;  %v1880_v12 = vmul.f32 %v1874_v45, %v3629_v36  ;;  %v2398_v27 = vld [vmem:[%s4246_s18 + $0x40] sm:$0xff] }
 0x4e6   : > { %v1712_v44 = vsel %vm1711_vm9, %v1710_v63, %v1594_v30  ;;  %v1960_v59 = vadd.f32 %v1959_v4, %v1958_v62  ;;  %v1661_v48 = vsel %vm936_vm6, %v1659_v6, 0.0 }
 0x4e7   : > { %v2000_v35 = vrot.slane %v1999_v5, 1  ;;  %v1662_v31 = vadd.f32 %v1661_v48, %v1660_v58  ;;  %v1713_v8 = vsel %vm872_vm5, %v1712_v44, %v1631_v49  ;;  %v1882_v28 = vsel %vm936_vm6, %v1880_v12, 0.0  ;;  %v2403_v12 = vld [vmem:[%s4246_s18 + $0x68] sm:$0xff] }
 0x4e8   : > { %v1961_v0 = vrot.slane %v1960_v59, 2  ;;  %v1693_v11 = vpop.permute.xlu1 %1692  ;;  %v2166_v58 = vmul.f32 %v2576_v14, %v2157_v46 }
 0x4e9   : > { %v2001_v16 = vadd.f32 %v2000_v35, %v1999_v5  ;;  %v1663_v40 = vrot.slane %v1662_v31, 4  ;;  %v1696_v55 = vmul.f32 %v1693_v11, %v3960_v61  ;;  %v2279_v11 = vld [vmem:[%s4244_s16] sm:$0xff] }
 0x4ea   : > { %v1962_v43 = vadd.f32 %v1961_v0, %v1960_v59  ;;  %v2280_v0 = vld [vmem:[%s4244_s16 + $0x8] sm:$0xff] }
 0x4eb   : > { %v2153_v10 = vsel %vm1711_vm9, %v2152_v15, %v2001_v16  ;;  %v1664_v18 = vadd.f32 %v1663_v40, %v1662_v31  ;;  %v1698_v47 = vsel %vm936_vm6, %v1696_v55, 0.0 }
 0x4ec   : > { %v1963_v38 = vrot.slane %v1962_v43, 1  ;;  %v1699_v9 = vadd.f32 %v1698_v47, %v1697_v2  ;;  %v2578_v2 = vld [vmem:[%s4242_s14] ss:$0 sm:$0xff]  ;;  %v2404_v47 = vld [vmem:[%s4246_s18 + $0x70] sm:$0xff] }
 0x4ed   : > { %v1665_v57 = vrot.slane %v1664_v18, 2  ;;  %v1878_v17 = vpop.permute.xlu1 %1877 }
 0x4ee   : > { %v1964_v3 = vadd.f32 %v1963_v38, %v1962_v43  ;;  %v1700_v1 = vrot.slane %v1699_v9, 4  ;;  %v1881_v61 = vmul.f32 %v1878_v17, %v3854_v13  ;;  %v2402_v38 = vld [vmem:[%s4246_s18 + $0x60] sm:$0xff]  ;;  %v2399_v17 = vld [vmem:[%s4246_s18 + $0x48] sm:$0xff] }
 0x4ef   : > { %v1666_v34 = vadd.f32 %v1665_v57, %v1664_v18  ;;  %v2405_v18 = vld [vmem:[%s4246_s18 + $0x78] sm:$0xff]  ;;  %v2400_v57 = vld [vmem:[%s4246_s18 + $0x50] sm:$0xff] }
 0x4f0   : > { %v2154_v15 = vsel %vm872_vm5, %v2153_v10, %v1964_v3  ;;  %v1701_v51 = vadd.f32 %v1700_v1, %v1699_v9  ;;  %v1883_v33 = vsel %vm936_vm6, %v1881_v61, 0.0  ;;  %v2401_v9 = vld [vmem:[%s4246_s18 + $0x58] sm:$0xff]  ;;  %v2396_v1 = vld [vmem:[%s4246_s18 + $0x30] sm:$0xff]  ;;  %v2395_v61 = vld [vmem:[%s4246_s18 + $0x28] sm:$0xff] }
 0x4f1   : > { %v1667_v29 = vrot.slane %v1666_v34, 1  ;;  %v1884_v36 = vadd.f32 %v1883_v33, %v1882_v28  ;;  %v2155_v25 = vsel %vm858_vm4, %v2154_v15, %v1927_v19  ;;  %v3010_v30 = vpop.eup %3009  ;;  %v2397_v3 = vld [vmem:[%s4246_s18 + $0x38] sm:$0xff]  ;;  %v2394_v19 = vld [vmem:[%s4246_s18 + $0x20] sm:$0xff]  ;;  %v2392_v28 = vld [vmem:[%s4246_s18 + $0x10] sm:$0xff] }
 0x4f2   : > { %v1702_v23 = vrot.slane %v1701_v51, 2  ;;  %v814_v49 = vmul.f32 %v3010_v30, %v3388_v22  ;;  %v2282_v22 = vld [vmem:[%s4244_s16 + $0x18] sm:$0xff]  ;;  %v2391_v15 = vld [vmem:[%s4246_s18 + $0x8] sm:$0xff]  ;;  %v2580_v33 = vld [vmem:[%s4245_s17] ss:$0 sm:$0xff] }
 0x4f3   : > { %v1668_v39 = vadd.f32 %v1667_v29, %v1666_v34  ;;  %v1885_v50 = vrot.slane %v1884_v36, 4  ;;  %2757 = vmatpush3.msra.mxu0 %v2282_v22  ;;  %v2393_v34 = vld [vmem:[%s4246_s18 + $0x18] sm:$0xff] }
 0x4f4   : > { %v1703_v42 = vadd.f32 %v1702_v23, %v1701_v51  ;;  %2758 = vmatprep.subr.mxu0 %v4312_v41  ;;  %v2390_v51 = vld [vmem:[%s4246_s18] sm:$0xff] }
 0x4f5   : > { %v1714_v13 = vsel %vm858_vm4, %v1713_v8, %v1668_v39  ;;  %v1886_v21 = vadd.f32 %v1885_v50, %v1884_v36  ;;  %v2281_v8 = vld [vmem:[%s4244_s16 + $0x10] sm:$0xff] }
 0x4f6   : > { %v1704_v60 = vrot.slane %v1703_v42, 1  ;;  %2759 = vmatpush3.msra.mxu0 %v2281_v8 }
 0x4f7   : > { %v1887_v63 = vrot.slane %v1886_v21, 2  ;;  %2760 = vmatprep.subr.mxu0 %v4312_v41 }
 0x4f8   : > { %v1705_v37 = vadd.f32 %v1704_v60, %v1703_v42  ;;  %2761 = vmatpush3.msra.mxu0 %v2280_v0 }
 0x4f9   : > { %v1888_v56 = vadd.f32 %v1887_v63, %v1886_v21  ;;  %2762 = vmatprep.subr.mxu0 %v4312_v41 }
 0x4fa   : > { %v1715_v32 = vsel %vm844_vm3, %v1714_v13, %v1705_v37  ;;  %2763 = vmatpush3.msra.mxu0 %v2279_v11 }
 0x4fb   : > { %v1889_v62 = vrot.slane %v1888_v56, 1 }
 0x4fd   : > { %v1890_v52 = vadd.f32 %v1889_v62, %v1888_v56 }
 0x4ff   : > { %v2156_v4 = vsel %vm844_vm3, %v2155_v25, %v1890_v52 }
 0x500   : > { %v2158_v6 = vadd.f32 %v2156_v4, %v1715_v32 }
 0x502   : > { %v2167_v5 = vadd.f32 %v2166_v58, %v2158_v6 }
 0x504   : > { %v2168_v24 = vmul.f32 %v2167_v5, %v814_v49 }
 0x506   : > { %2754 = vmatmul.mubr.msk.f32.vlgmr.msra.gmra.mxu1 %vm936_vm6, %v2168_v24 }
 0x507   : > { %2799 = vmatprep.mubr.msk.f32.mxu1 %vm3081_vm1, %v4312_v41  ;;  %2768 = vmatpush3.msra.mxu1 %v2405_v18 }
 0x508   : > { %2769 = vmatprep.subr.mxu1 %v4312_v41 }
 0x509   : > { %2770 = vmatpush3.msra.mxu1 %v2404_v47 }
 0x50a   : > { %2771 = vmatprep.subr.mxu1 %v4312_v41 }
 0x50b   : > { %2772 = vmatpush3.msra.mxu1 %v2403_v12 }
 0x50c   : > { %2773 = vmatprep.subr.mxu1 %v4312_v41 }
 0x50d   : > { %2774 = vmatpush3.msra.mxu1 %v2402_v38 }
 0x50e   : > { %2775 = vmatprep.subr.mxu1 %v4312_v41 }
 0x50f   : > { %2776 = vmatpush3.msra.mxu1 %v2401_v9 }
 0x510   : > { %2777 = vmatprep.subr.mxu1 %v4312_v41 }
 0x511   : > { %2778 = vmatpush3.msra.mxu1 %v2400_v57 }
 0x512   : > { %2779 = vmatprep.subr.mxu1 %v4312_v41 }
 0x513   : > { %2780 = vmatpush3.msra.mxu1 %v2399_v17 }
 0x514   : > { %2781 = vmatprep.subr.mxu1 %v4312_v41 }
 0x515   : > { %2782 = vmatpush3.msra.mxu1 %v2398_v27 }
 0x516   : > { %2783 = vmatprep.subr.mxu1 %v4312_v41 }
 0x517   : > { %2784 = vmatpush3.msra.mxu1 %v2397_v3 }
 0x518   : > { %2785 = vmatprep.subr.mxu1 %v4312_v41 }
 0x519   : > { %2786 = vmatpush3.msra.mxu1 %v2396_v1 }
 0x51a   : > { %2787 = vmatprep.subr.mxu1 %v4312_v41 }
 0x51b   : > { %2788 = vmatpush3.msra.mxu1 %v2395_v61 }
 0x51c   : > { %2789 = vmatprep.subr.mxu1 %v4312_v41 }
 0x51d   : > { %2790 = vmatpush3.msra.mxu1 %v2394_v19 }
 0x51e   : > { %2791 = vmatprep.subr.mxu1 %v4312_v41 }
 0x51f   : > { %2792 = vmatpush3.msra.mxu1 %v2393_v34 }
 0x520   : > { %2793 = vmatprep.subr.mxu1 %v4312_v41 }
 0x521   : > { %2794 = vmatpush3.msra.mxu1 %v2392_v28 }
 0x522   : > { %2795 = vmatprep.subr.mxu1 %v4312_v41 }
 0x523   : > { %2796 = vmatpush3.msra.mxu1 %v2391_v15 }
 0x524   : > { %2797 = vmatprep.subr.mxu1 %v4312_v41 }
 0x525   : > { %2798 = vmatpush3.msra.mxu1 %v2390_v51 }
 0x5c6   : > { %v2246_v53 = vpop.f32.mrf.mxu1 }
 0x5c7   : > { %v2250_v54 = vsel %vm626_vm0, %v2246_v53, 0.0 }
 0x5c8   : > { %2251 = vadd.xlane.f32.xlu1 %v2250_v54  ;;  %v2755_v44 = vpop.f32.mrf.mxu1 }
 0x5c9   : > { %v2582_v44 = vld [vmem:[%s4247_s19] ss:$0 sm:$0xff] }
 0x651   : > { %v2252_v59 = vpop.xlane.xlu1 %2251 }
 0x652   : > { %v2253_v48 = vmul.f32 0.03125, %v2252_v59 }
 0x654   : > { %v2254_v26 = vsub.f32 %v2246_v53, %v2253_v48 }
 0x656   : > { %v2255_v35 = vmul.f32 %v2254_v26, %v2254_v26 }
 0x658   : > { %v2256_v31 = vsel %vm626_vm0, %v2255_v35, 0.0  ;;  %v3017_v35 = vld [vmem:[%s3258_s27] sm:$0xff] }
 0x659   : > { %2257 = vadd.xlane.f32.xlu0 %v2256_v31 }
 0x6e2   : > { %v2258_v45 = vpop.xlane.xlu0 %2257 }
 0x6e3   : > { %v2259_v16 = vmul.f32 0.03125, %v2258_v45 }
 0x6e5   : > { %v2260_v40 = vadd.f32 1e-05, %v2259_v16 }
 0x6e7   : > { %3011 = vrsqrt.f32 %v2260_v40 }
 0x6f4   : > { %v3012_v55 = vpop.eup %3011 }
 0x6f5   : > { %v2262_v43 = vmul.f32 %v3012_v55, %v2254_v26 }
 0x6f7   : > { %v2270_v20 = vmul.f32 %v2578_v2, %v2262_v43 }
 0x6f9   : > { %v2278_v10 = vadd.f32 %v2579_v7, %v2270_v20 }
 0x6fb   : > { %2765 = vmatmul.mubr.msk.f32.vlgmr.msra.gmra.mxu0 %vm626_vm0, %v2278_v10 }
 0x7bb   : > { %v2359_v29 = vpop.f32.mrf.mxu0 }
 0x7bc   : > { %v2360_v36 = vadd.f32 %v2580_v33, %v2359_v29 }
 0x7bd   : > { %v2766_v25 = vpop.f32.mrf.mxu0 }
 0x7be   : > { %v2364_v23 = vmul.f32 0.70710677, %v2360_v36  ;;  %v2363_v24 = vmul.f32 0.5, %v2360_v36 }
 0x7c0   : > { %v2365_v39 = vand.u32 2147483647, %v2364_v23  ;;  %vm2385_vm10 = vcmp.ge.f32.partialorder %v2364_v23, 0.0 }
 0x7c2   : > { %v2366_v50 = vmul.f32 0.3275911, %v2365_v39  ;;  %v2379_v13 = vsub.f32 0.0, %v2365_v39 }
 0x7c4   : > { %v2367_v42 = vadd.f32 1.0, %v2366_v50  ;;  %v2380_v21 = vmul.f32 %v2379_v13, %v2365_v39 }
 0x7c6   : > { %3013 = vrcp.f32 %v2367_v42  ;;  %v2381_v37 = vmul.f32 1.442695, %v2380_v21 }
 0x7c8   : > { %3015 = vpow2.f32 %v2381_v37 }
 0x7d3   : > { %v3014_v60 = vpop.eup %3013 }
 0x7d4   : > { %v2370_v63 = vmul.f32 1.0614054, %v3014_v60 }
 0x7d5   : > { %v3016_v4 = vpop.eup %3015 }
 0x7d6   : > { %v2371_v56 = vadd.f32 -1.4531521, %v2370_v63 }
 0x7d8   : > { %v2372_v41 = vmul.f32 %v3014_v60, %v2371_v56 }
 0x7da   : > { %v2373_v32 = vadd.f32 1.4214138, %v2372_v41 }
 0x7dc   : > { %v2374_v62 = vmul.f32 %v3014_v60, %v2373_v32 }
 0x7de   : > { %v2375_v46 = vadd.f32 -0.28449672, %v2374_v62 }
 0x7e0   : > { %v2376_v52 = vmul.f32 %v3014_v60, %v2375_v46 }
 0x7e2   : > { %v2377_v14 = vadd.f32 0.2548296, %v2376_v52 }
 0x7e4   : > { %v2378_v30 = vmul.f32 %v3014_v60, %v2377_v14 }
 0x7e6   : > { %v2383_v6 = vmul.f32 %v3016_v4, %v2378_v30 }
 0x7e8   : > { %v2384_v58 = vsub.f32 1.0, %v2383_v6 }
 0x7ea   : > { %v2386_v49 = vsub.f32 0.0, %v2384_v58 }
 0x7ec   : > { %v2387_v5 = vsel %vm2385_vm10, %v2384_v58, %v2386_v49 }
 0x7ed   : > { %v2388_v53 = vadd.f32 1.0, %v2387_v5 }
 0x7ef   : > { %v2389_v54 = vmul.f32 %v2388_v53, %v2363_v24 }
 0x7f1   : > { %2800 = vmatmul.mubr.f32.vlgmr.msra.gmra.mxu1 %v2389_v54 }
 0x8b1   : > { %v2479_v59 = vpop.f32.mrf.mxu1 }
 0x8b2   : > { %v2480_v48 = vadd.f32 %v2582_v44, %v2479_v59 }
 0x8b3   : > { %v2801_v26 = vpop.f32.mrf.mxu1 }
 0x8b4   : > { %v2483_v31 = vadd.f32 %v3017_v35, %v2480_v48 }
 0x8b6   : > { %2484 = vst.msk [vmem:[%s620_s0] sm:$0xff] %vm626_vm0, %v2483_v31 }
 0x8b7   : > { %3031 = shalt.err (!%p3028_p3)
}
 0x8b8   : > { %s3032_s27 = scalar_lea.hbm %s2497_s24, 128  ;;  %s3036_s30 = scalar_lea.hbm %s4248_s20, 256 }
 0x8b9   : > { %p3033_p4 = scmp.ne.s32.totalorder %s2497_s24, %s3032_s27  ;;  %p3037_p9 = scmp.lt.s32.totalorder %s2497_s24, %s4248_s20 }
 0x8ba   : > { %p3038_p10 = scmp.lt.s32.totalorder %s3036_s30, %s3032_s27 }
 0x8bb   : > { %p3034_p7 = pnand %p3033_p4, %p3243_p5 }
 0x8bc   : > { %p3039_p11 = por %p3038_p10, %p3037_p9 }
 0x8bd   : > { %p3035_p8 = pneg %p3034_p7 }
 0x8bf   : > { %p3040_p12 = pnand %p3039_p11, %p3035_p8 }
 0x8c1   : > { %3043 = shalt.err (!%p3040_p12)
}
 0x8c2   : > { %2802 = dma.vmem_to_hbm [thread:$0]  (%p3243_p5), %s2500_s3, 128, %s2497_s24, %s2486_s5  }
 0x8c3 PF: > { %s4313_s6 = sld [smem:[#allocation7_spill]] }
 0x8c4   : > { %s4314_s1 = sld [smem:[#allocation5_spill]] }
 0x8c9   : > { %p2808_p13 = scmp.ge.s32.totalorder %s4313_s6, 2 }
 0x8ca   : > { %s2511_s26 = sand.u32 1, %s4314_s1  }
 0x8cb   : > { %p2805_p0 = pnand %p2808_p13, %p3247_p6  ;;  %s2512_s23 = scalar_lea.sflag [#allocation3], %s2511_s26 }
 0x8cd   : > { %p2806_p1 = pneg %p2805_p0 }
 0x8cf   : > { %3061 = dma.done.wait (%p2806_p1), %s2512_s23, 128  }
 0x8d0   : > { %3063 = vsyncadd (%p2806_p1), %s2512_s23, 4294967168  ;;  %s4316_s24 = sld [smem:[#allocation8_spill]]  ;;  %s4319_s1 = smov %s3070_s22 }
 0x8d1   : > { %s4317_s27 = sld [smem:[#allocation6_spill]] }
 0x8d2   : > { %s4318_s23 = sld [smem:[#allocation9_spill]] }
 0x8d6   : > { %p30_p2 = scmp.ge.s32.totalorder %s4316_s24, 4  }
 0x8d7   : > { %s4320_s22 = smov %s4317_s27 }
 0x8d8   :  { %32 = sbr.rel (!%p30_p2) target bundleno = 11 (0xb), region = 135 }
 0x8dd   :  { %2517 = vsyncpa [#allocation3], 1 }
 0x8de   :  { %2519 = vsyncpa [#allocation3 + $0x1], 1 }

</bundles_post_ra>
